<compile_context>
chip_gen: v6e
topology: v6e:2x2x1
jax: 0.10.0
libtpu: 0.0.40
codegen_flags: <defaults>
</compile_context>

<pallas_src>
import functools

import numpy as np
import jax
import jax.numpy as jnp
from jax import lax
from jax.experimental import pallas as pl
from jax.experimental.pallas import tpu as pltpu


_UNROLL_MAX_FACES = 64  # fully unroll the face loop below this (F=12 in the example)


# ----------------------------------------------------------------------------- kernel
def _silhouette_loss_kernel(coef_ref, ref_ref, img_ref, loss_ref, *,
                            num_faces, img_h, img_w, fold):
    """Single invocation: rasterize the full (packed) silhouette image and compute
    sum((silhouette - reference)**2).

    coef_ref : SMEM (9*F,) f32 — per face, 3 edges x (A, B, C) with e = A*px + B*py + C.
    ref_ref  : VMEM (H2, WL) f32 — reference image packed lane-dense (WL = 128 for W=64).
    img_ref  : VMEM (H2, WL) f32 — output silhouette (same packing).
    loss_ref : SMEM (1, 1)   f32 — scalar loss.
    """
    h2, wl = img_ref.shape

    # Pixel-centre NDC coordinates ([-1, 1], y up) for the packed layout:
    # packed (r, c) corresponds to image row i = r*fold + c // W, col j = c % W.
    rr = lax.broadcasted_iota(jnp.int32, (h2, wl), 0)
    cc = lax.broadcasted_iota(jnp.int32, (h2, wl), 1)
    if fold == 1:
        ii = rr
        jj = cc
    else:
        # fold > 1 only happens when img_w is a power of two (128 % img_w == 0).
        shift = int(img_w).bit_length() - 1
        ii = rr * fold + jnp.right_shift(cc, shift)
        jj = jnp.bitwise_and(cc, img_w - 1)
    ii = ii.astype(jnp.float32)
    jj = jj.astype(jnp.float32)
    px = (jj + 0.5) * (2.0 / img_w) - 1.0
    py = 1.0 - (ii + 0.5) * (2.0 / img_h)

    def face_mask(base):
        # Edge functions from precomputed affine coefficients (scalars from SMEM).
        e0 = coef_ref[base + 0] * px + coef_ref[base + 1] * py + coef_ref[base + 2]
        e1 = coef_ref[base + 3] * px + coef_ref[base + 4] * py + coef_ref[base + 5]
        e2 = coef_ref[base + 6] * px + coef_ref[base + 7] * py + coef_ref[base + 8]
        emin = jnp.minimum(jnp.minimum(e0, e1), e2)
        emax = jnp.maximum(jnp.maximum(e0, e1), e2)
        # Inside for either winding: all edges >= 0  OR  all edges <= 0.
        return (emin >= 0.0) | (emax <= 0.0)

    if num_faces <= _UNROLL_MAX_FACES:
        # Fully unrolled: constant SMEM offsets, boolean OR accumulation.
        inside = face_mask(0)
        for f in range(1, num_faces):
            inside = inside | face_mask(f * 9)
        sil = inside.astype(jnp.float32)
    else:
        # Large-mesh fallback: dynamic SMEM scalar reads, float max accumulation.
        def body(f, s):
            return jnp.maximum(s, face_mask(f * 9).astype(jnp.float32))
        sil = lax.fori_loop(0, num_faces, body, jnp.zeros((h2, wl), jnp.float32))

    img_ref[...] = sil
    d = sil - ref_ref[...]
    loss_ref[0, 0] = jnp.sum(d * d)


# ---------------------------------------------------------------------------- wrapper
def _pack_layout(height, width):
    """Fold image rows so the lane (last) dim is 128-dense when W < 128."""
    if width % 128 == 0 or 128 % width != 0:
        return height, width, 1
    fold = 128 // width
    if height % fold != 0:
        return height, width, 1
    return height // fold, 128, fold


def _edge_coefficients(vertices, faces, rotation, camera_position, focal, eps=1e-6):
    """Project vertices once and build per-edge affine coefficients (F, 3, 3) -> (9F,)."""
    vr = jnp.dot(vertices, rotation.T, precision=lax.Precision.HIGHEST)
    vc = vr - camera_position[None, :]              # camera at cam, looking along -z
    depth = -vc[:, 2]
    inv = focal / jnp.where(depth > eps, depth, 1.0)
    xs = vc[:, 0] * inv
    ys = vc[:, 1] * inv

    xa = xs[faces]                                   # (F, 3)
    ya = ys[faces]
    da = depth[faces]
    xb = jnp.roll(xa, -1, axis=1)                    # edges v0->v1, v1->v2, v2->v0
    yb = jnp.roll(ya, -1, axis=1)
    # e = (xb-xa)*(py-ya) - (yb-ya)*(px-xa) = A*px + B*py + C
    A = ya - yb
    B = xb - xa
    C = (yb - ya) * xa - (xb - xa) * ya
    coef = jnp.stack([A, B, C], axis=-1)             # (F, 3, 3)

    # Near-plane handling: faces with any vertex at depth <= eps get sentinel
    # coefficients whose edge set is never all-positive nor all-negative.
    valid = jnp.all(da > eps, axis=1)
    sentinel = jnp.array([[0.0, 0.0, -1.0],
                          [0.0, 0.0, 1.0],
                          [0.0, 0.0, 0.0]], jnp.float32)
    coef = jnp.where(valid[:, None, None], coef, sentinel[None])
    return coef.reshape(-1).astype(jnp.float32)


def render_silhouette_and_loss(vertices, faces, image_ref, camera_position, rotation,
                               *, focal):
    """vertices: (1,V,3) f32; faces: (1,F,3) i32; image_ref: (1,H,W) f32.
    Returns (images (1,H,W) f32, loss scalar f32)."""
    _, H, W = image_ref.shape
    F = faces.shape[1]

    coef = _edge_coefficients(vertices[0], faces[0], rotation, camera_position,
                              jnp.float32(focal))

    H2, WL, fold = _pack_layout(H, W)
    ref_packed = image_ref.reshape(H2, WL)           # free row-major view

    kernel = functools.partial(_silhouette_loss_kernel, num_faces=F,
                               img_h=H, img_w=W, fold=fold)

    img_packed, loss = pl.pallas_call(
        kernel,
        out_shape=(
            jax.ShapeDtypeStruct((H2, WL), jnp.float32),   # packed silhouette
            jax.ShapeDtypeStruct((1, 1), jnp.float32),     # scalar loss
        ),
        in_specs=[
            pl.BlockSpec(memory_space=pltpu.MemorySpace.SMEM),   # edge coefficients (9F,)
            pl.BlockSpec(memory_space=pltpu.MemorySpace.VMEM),   # packed reference image
        ],
        out_specs=(
            pl.BlockSpec(memory_space=pltpu.MemorySpace.VMEM),   # packed silhouette
            pl.BlockSpec(memory_space=pltpu.MemorySpace.SMEM),   # loss
        ),
    )(coef, ref_packed)

    images = img_packed.reshape(1, H, W)
    return images, loss[0, 0]


# ------------------------------------------------------------------------------- glue
def rotation_from_axis_angle(axis_angle):
    """Rodrigues formula; mirrors nr.rotation_from_axis(angle * axis)."""
    angle = float(np.linalg.norm(axis_angle))
    if angle < 1e-12:
        return np.eye(3, dtype=np.float32)
    k = np.asarray(axis_angle, np.float32) / angle
    K = np.array([[0.0, -k[2], k[1]],
                  [k[2], 0.0, -k[0]],
                  [-k[1], k[0], 0.0]], np.float32)
    R = np.eye(3, dtype=np.float32) + np.sin(angle) * K + (1.0 - np.cos(angle)) * (K @ K)
    return R.astype(np.float32)


def make_cube_mesh():
    """Deterministic stand-in for nr.load_obj(filename_obj): a unit cube."""
    verts = np.array([[x, y, z]
                      for x in (-0.5, 0.5)
                      for y in (-0.5, 0.5)
                      for z in (-0.5, 0.5)], np.float32)
    faces = np.array([
        [0, 1, 3], [0, 3, 2],   # x = -0.5
        [4, 6, 7], [4, 7, 5],   # x = +0.5
        [0, 4, 5], [0, 5, 1],   # y = -0.5
        [2, 3, 7], [2, 7, 6],   # y = +0.5
        [0, 2, 6], [0, 6, 4],   # z = -0.5
        [1, 5, 7], [1, 7, 3],   # z = +0.5
    ], np.int32)
    return verts, faces


if __name__ == "__main__":
    H = W = 64  # small synthetic render size

    verts_np, faces_np = make_cube_mesh()
    key = jax.random.PRNGKey(0)
    k_vert, k_img = jax.random.split(key)

    # "Loaded" mesh: cube + small deterministic perturbation (stand-in for the .obj).
    vertices = jnp.asarray(verts_np)[None, :, :] + \
        0.05 * jax.random.normal(k_vert, (1, verts_np.shape[0], 3), jnp.float32)
    faces = jnp.asarray(faces_np)[None, :, :]
    # Stand-in for imread(filename_ref).mean(-1)/255 -> values in [0, 1], shape (1,H,W).
    image_ref = jax.random.uniform(k_img, (1, H, W), dtype=jnp.float32)

    # forward(): angle = pi/2 about y; camera at (0, 0, 2.732).
    angle = np.pi / 2
    axis_angle = angle * np.array([0.0, 1.0, 0.0], np.float32)
    rotation = jnp.asarray(rotation_from_axis_angle(axis_angle))
    camera_position = jnp.array([0.0, 0.0, 2.732], jnp.float32)
    focal = float(1.0 / np.tan(np.radians(30.0)))  # nr default viewing_angle = 30 deg

    render = jax.jit(lambda v, f, iref, cam, rot:
                     render_silhouette_and_loss(v, f, iref, cam, rot, focal=focal))
    images, loss = render(vertices, faces, image_ref, camera_position, rotation)

    jax.block_until_ready((images, loss))
    assert images.shape == (1, H, W) and images.dtype == jnp.float32
    assert loss.shape == () and loss.dtype == jnp.float32
    print("KERNEL_OK")
</pallas_src>

<mosaic_0001>
module attributes {stable_mosaic.version = 11 : i64} {
  func.func @_silhouette_loss_kernel(%arg0: memref<108xf32, #tpu.memory_space<smem>>, %arg1: memref<32x128xf32, #tpu.memory_space<vmem>>, %arg2: memref<32x128xf32, #tpu.memory_space<vmem>>, %arg3: memref<1x1xf32, #tpu.memory_space<smem>>) attributes {dimension_semantics = [], scalar_prefetch = 0 : i64, scratch_operands = 0 : i64, tpu.core_type = #tpu.core_type<tc>} {
    %0 = tpu.iota {dimensions = array<i32: 0>} : vector<32x128xi32>
    %1 = tpu.iota {dimensions = array<i32: 1>} : vector<32x128xi32>
    %c2_i32 = arith.constant 2 : i32
    %2 = vector.broadcast %c2_i32 : i32 to vector<32x128xi32>
    %3 = arith.muli %0, %2 : vector<32x128xi32>
    %c6_i32 = arith.constant 6 : i32
    %4 = vector.broadcast %c6_i32 : i32 to vector<32x128xi32>
    %5 = arith.shrsi %1, %4 : vector<32x128xi32>
    %6 = arith.addi %3, %5 : vector<32x128xi32>
    %c63_i32 = arith.constant 63 : i32
    %7 = vector.broadcast %c63_i32 : i32 to vector<32x128xi32>
    %8 = arith.andi %1, %7 : vector<32x128xi32>
    %9 = arith.sitofp %6 : vector<32x128xi32> to vector<32x128xf32>
    %10 = arith.sitofp %8 : vector<32x128xi32> to vector<32x128xf32>
    %cst = arith.constant 5.000000e-01 : f32
    %11 = vector.broadcast %cst : f32 to vector<32x128xf32>
    %12 = arith.addf %10, %11 : vector<32x128xf32>
    %cst_0 = arith.constant 3.125000e-02 : f32
    %13 = vector.broadcast %cst_0 : f32 to vector<32x128xf32>
    %14 = arith.mulf %12, %13 : vector<32x128xf32>
    %cst_1 = arith.constant 1.000000e+00 : f32
    %15 = vector.broadcast %cst_1 : f32 to vector<32x128xf32>
    %16 = arith.subf %14, %15 : vector<32x128xf32>
    %cst_2 = arith.constant 5.000000e-01 : f32
    %17 = vector.broadcast %cst_2 : f32 to vector<32x128xf32>
    %18 = arith.addf %9, %17 : vector<32x128xf32>
    %cst_3 = arith.constant 3.125000e-02 : f32
    %19 = vector.broadcast %cst_3 : f32 to vector<32x128xf32>
    %20 = arith.mulf %18, %19 : vector<32x128xf32>
    %cst_4 = arith.constant 1.000000e+00 : f32
    %21 = vector.broadcast %cst_4 : f32 to vector<32x128xf32>
    %22 = arith.subf %21, %20 : vector<32x128xf32>
    %c0 = arith.constant 0 : index
    %23 = memref.load %arg0[%c0] : memref<108xf32, #tpu.memory_space<smem>>
    %24 = vector.broadcast %23 : f32 to vector<32x128xf32>
    %25 = arith.mulf %24, %16 : vector<32x128xf32>
    %c1 = arith.constant 1 : index
    %26 = memref.load %arg0[%c1] : memref<108xf32, #tpu.memory_space<smem>>
    %27 = vector.broadcast %26 : f32 to vector<32x128xf32>
    %28 = arith.mulf %27, %22 : vector<32x128xf32>
    %29 = arith.addf %25, %28 : vector<32x128xf32>
    %c2 = arith.constant 2 : index
    %30 = memref.load %arg0[%c2] : memref<108xf32, #tpu.memory_space<smem>>
    %31 = vector.broadcast %30 : f32 to vector<32x128xf32>
    %32 = arith.addf %29, %31 : vector<32x128xf32>
    %c3 = arith.constant 3 : index
    %33 = memref.load %arg0[%c3] : memref<108xf32, #tpu.memory_space<smem>>
    %34 = vector.broadcast %33 : f32 to vector<32x128xf32>
    %35 = arith.mulf %34, %16 : vector<32x128xf32>
    %c4 = arith.constant 4 : index
    %36 = memref.load %arg0[%c4] : memref<108xf32, #tpu.memory_space<smem>>
    %37 = vector.broadcast %36 : f32 to vector<32x128xf32>
    %38 = arith.mulf %37, %22 : vector<32x128xf32>
    %39 = arith.addf %35, %38 : vector<32x128xf32>
    %c5 = arith.constant 5 : index
    %40 = memref.load %arg0[%c5] : memref<108xf32, #tpu.memory_space<smem>>
    %41 = vector.broadcast %40 : f32 to vector<32x128xf32>
    %42 = arith.addf %39, %41 : vector<32x128xf32>
    %c6 = arith.constant 6 : index
    %43 = memref.load %arg0[%c6] : memref<108xf32, #tpu.memory_space<smem>>
    %44 = vector.broadcast %43 : f32 to vector<32x128xf32>
    %45 = arith.mulf %44, %16 : vector<32x128xf32>
    %c7 = arith.constant 7 : index
    %46 = memref.load %arg0[%c7] : memref<108xf32, #tpu.memory_space<smem>>
    %47 = vector.broadcast %46 : f32 to vector<32x128xf32>
    %48 = arith.mulf %47, %22 : vector<32x128xf32>
    %49 = arith.addf %45, %48 : vector<32x128xf32>
    %c8 = arith.constant 8 : index
    %50 = memref.load %arg0[%c8] : memref<108xf32, #tpu.memory_space<smem>>
    %51 = vector.broadcast %50 : f32 to vector<32x128xf32>
    %52 = arith.addf %49, %51 : vector<32x128xf32>
    %53 = arith.minimumf %32, %42 : vector<32x128xf32>
    %54 = arith.minimumf %53, %52 : vector<32x128xf32>
    %55 = arith.maximumf %32, %42 : vector<32x128xf32>
    %56 = arith.maximumf %55, %52 : vector<32x128xf32>
    %cst_5 = arith.constant 0.000000e+00 : f32
    %57 = vector.broadcast %cst_5 : f32 to vector<32x128xf32>
    %58 = arith.cmpf oge, %54, %57 : vector<32x128xf32>
    %cst_6 = arith.constant 0.000000e+00 : f32
    %59 = vector.broadcast %cst_6 : f32 to vector<32x128xf32>
    %60 = arith.cmpf ole, %56, %59 : vector<32x128xf32>
    %61 = arith.ori %58, %60 : vector<32x128xi1>
    %c9 = arith.constant 9 : index
    %62 = memref.load %arg0[%c9] : memref<108xf32, #tpu.memory_space<smem>>
    %63 = vector.broadcast %62 : f32 to vector<32x128xf32>
    %64 = arith.mulf %63, %16 : vector<32x128xf32>
    %c10 = arith.constant 10 : index
    %65 = memref.load %arg0[%c10] : memref<108xf32, #tpu.memory_space<smem>>
    %66 = vector.broadcast %65 : f32 to vector<32x128xf32>
    %67 = arith.mulf %66, %22 : vector<32x128xf32>
    %68 = arith.addf %64, %67 : vector<32x128xf32>
    %c11 = arith.constant 11 : index
    %69 = memref.load %arg0[%c11] : memref<108xf32, #tpu.memory_space<smem>>
    %70 = vector.broadcast %69 : f32 to vector<32x128xf32>
    %71 = arith.addf %68, %70 : vector<32x128xf32>
    %c12 = arith.constant 12 : index
    %72 = memref.load %arg0[%c12] : memref<108xf32, #tpu.memory_space<smem>>
    %73 = vector.broadcast %72 : f32 to vector<32x128xf32>
    %74 = arith.mulf %73, %16 : vector<32x128xf32>
    %c13 = arith.constant 13 : index
    %75 = memref.load %arg0[%c13] : memref<108xf32, #tpu.memory_space<smem>>
    %76 = vector.broadcast %75 : f32 to vector<32x128xf32>
    %77 = arith.mulf %76, %22 : vector<32x128xf32>
    %78 = arith.addf %74, %77 : vector<32x128xf32>
    %c14 = arith.constant 14 : index
    %79 = memref.load %arg0[%c14] : memref<108xf32, #tpu.memory_space<smem>>
    %80 = vector.broadcast %79 : f32 to vector<32x128xf32>
    %81 = arith.addf %78, %80 : vector<32x128xf32>
    %c15 = arith.constant 15 : index
    %82 = memref.load %arg0[%c15] : memref<108xf32, #tpu.memory_space<smem>>
    %83 = vector.broadcast %82 : f32 to vector<32x128xf32>
    %84 = arith.mulf %83, %16 : vector<32x128xf32>
    %c16 = arith.constant 16 : index
    %85 = memref.load %arg0[%c16] : memref<108xf32, #tpu.memory_space<smem>>
    %86 = vector.broadcast %85 : f32 to vector<32x128xf32>
    %87 = arith.mulf %86, %22 : vector<32x128xf32>
    %88 = arith.addf %84, %87 : vector<32x128xf32>
    %c17 = arith.constant 17 : index
    %89 = memref.load %arg0[%c17] : memref<108xf32, #tpu.memory_space<smem>>
    %90 = vector.broadcast %89 : f32 to vector<32x128xf32>
    %91 = arith.addf %88, %90 : vector<32x128xf32>
    %92 = arith.minimumf %71, %81 : vector<32x128xf32>
    %93 = arith.minimumf %92, %91 : vector<32x128xf32>
    %94 = arith.maximumf %71, %81 : vector<32x128xf32>
    %95 = arith.maximumf %94, %91 : vector<32x128xf32>
    %cst_7 = arith.constant 0.000000e+00 : f32
    %96 = vector.broadcast %cst_7 : f32 to vector<32x128xf32>
    %97 = arith.cmpf oge, %93, %96 : vector<32x128xf32>
    %cst_8 = arith.constant 0.000000e+00 : f32
    %98 = vector.broadcast %cst_8 : f32 to vector<32x128xf32>
    %99 = arith.cmpf ole, %95, %98 : vector<32x128xf32>
    %100 = arith.ori %97, %99 : vector<32x128xi1>
    %101 = arith.ori %61, %100 : vector<32x128xi1>
    %c18 = arith.constant 18 : index
    %102 = memref.load %arg0[%c18] : memref<108xf32, #tpu.memory_space<smem>>
    %103 = vector.broadcast %102 : f32 to vector<32x128xf32>
    %104 = arith.mulf %103, %16 : vector<32x128xf32>
    %c19 = arith.constant 19 : index
    %105 = memref.load %arg0[%c19] : memref<108xf32, #tpu.memory_space<smem>>
    %106 = vector.broadcast %105 : f32 to vector<32x128xf32>
    %107 = arith.mulf %106, %22 : vector<32x128xf32>
    %108 = arith.addf %104, %107 : vector<32x128xf32>
    %c20 = arith.constant 20 : index
    %109 = memref.load %arg0[%c20] : memref<108xf32, #tpu.memory_space<smem>>
    %110 = vector.broadcast %109 : f32 to vector<32x128xf32>
    %111 = arith.addf %108, %110 : vector<32x128xf32>
    %c21 = arith.constant 21 : index
    %112 = memref.load %arg0[%c21] : memref<108xf32, #tpu.memory_space<smem>>
    %113 = vector.broadcast %112 : f32 to vector<32x128xf32>
    %114 = arith.mulf %113, %16 : vector<32x128xf32>
    %c22 = arith.constant 22 : index
    %115 = memref.load %arg0[%c22] : memref<108xf32, #tpu.memory_space<smem>>
    %116 = vector.broadcast %115 : f32 to vector<32x128xf32>
    %117 = arith.mulf %116, %22 : vector<32x128xf32>
    %118 = arith.addf %114, %117 : vector<32x128xf32>
    %c23 = arith.constant 23 : index
    %119 = memref.load %arg0[%c23] : memref<108xf32, #tpu.memory_space<smem>>
    %120 = vector.broadcast %119 : f32 to vector<32x128xf32>
    %121 = arith.addf %118, %120 : vector<32x128xf32>
    %c24 = arith.constant 24 : index
    %122 = memref.load %arg0[%c24] : memref<108xf32, #tpu.memory_space<smem>>
    %123 = vector.broadcast %122 : f32 to vector<32x128xf32>
    %124 = arith.mulf %123, %16 : vector<32x128xf32>
    %c25 = arith.constant 25 : index
    %125 = memref.load %arg0[%c25] : memref<108xf32, #tpu.memory_space<smem>>
    %126 = vector.broadcast %125 : f32 to vector<32x128xf32>
    %127 = arith.mulf %126, %22 : vector<32x128xf32>
    %128 = arith.addf %124, %127 : vector<32x128xf32>
    %c26 = arith.constant 26 : index
    %129 = memref.load %arg0[%c26] : memref<108xf32, #tpu.memory_space<smem>>
    %130 = vector.broadcast %129 : f32 to vector<32x128xf32>
    %131 = arith.addf %128, %130 : vector<32x128xf32>
    %132 = arith.minimumf %111, %121 : vector<32x128xf32>
    %133 = arith.minimumf %132, %131 : vector<32x128xf32>
    %134 = arith.maximumf %111, %121 : vector<32x128xf32>
    %135 = arith.maximumf %134, %131 : vector<32x128xf32>
    %cst_9 = arith.constant 0.000000e+00 : f32
    %136 = vector.broadcast %cst_9 : f32 to vector<32x128xf32>
    %137 = arith.cmpf oge, %133, %136 : vector<32x128xf32>
    %cst_10 = arith.constant 0.000000e+00 : f32
    %138 = vector.broadcast %cst_10 : f32 to vector<32x128xf32>
    %139 = arith.cmpf ole, %135, %138 : vector<32x128xf32>
    %140 = arith.ori %137, %139 : vector<32x128xi1>
    %141 = arith.ori %101, %140 : vector<32x128xi1>
    %c27 = arith.constant 27 : index
    %142 = memref.load %arg0[%c27] : memref<108xf32, #tpu.memory_space<smem>>
    %143 = vector.broadcast %142 : f32 to vector<32x128xf32>
    %144 = arith.mulf %143, %16 : vector<32x128xf32>
    %c28 = arith.constant 28 : index
    %145 = memref.load %arg0[%c28] : memref<108xf32, #tpu.memory_space<smem>>
    %146 = vector.broadcast %145 : f32 to vector<32x128xf32>
    %147 = arith.mulf %146, %22 : vector<32x128xf32>
    %148 = arith.addf %144, %147 : vector<32x128xf32>
    %c29 = arith.constant 29 : index
    %149 = memref.load %arg0[%c29] : memref<108xf32, #tpu.memory_space<smem>>
    %150 = vector.broadcast %149 : f32 to vector<32x128xf32>
    %151 = arith.addf %148, %150 : vector<32x128xf32>
    %c30 = arith.constant 30 : index
    %152 = memref.load %arg0[%c30] : memref<108xf32, #tpu.memory_space<smem>>
    %153 = vector.broadcast %152 : f32 to vector<32x128xf32>
    %154 = arith.mulf %153, %16 : vector<32x128xf32>
    %c31 = arith.constant 31 : index
    %155 = memref.load %arg0[%c31] : memref<108xf32, #tpu.memory_space<smem>>
    %156 = vector.broadcast %155 : f32 to vector<32x128xf32>
    %157 = arith.mulf %156, %22 : vector<32x128xf32>
    %158 = arith.addf %154, %157 : vector<32x128xf32>
    %c32 = arith.constant 32 : index
    %159 = memref.load %arg0[%c32] : memref<108xf32, #tpu.memory_space<smem>>
    %160 = vector.broadcast %159 : f32 to vector<32x128xf32>
    %161 = arith.addf %158, %160 : vector<32x128xf32>
    %c33 = arith.constant 33 : index
    %162 = memref.load %arg0[%c33] : memref<108xf32, #tpu.memory_space<smem>>
    %163 = vector.broadcast %162 : f32 to vector<32x128xf32>
    %164 = arith.mulf %163, %16 : vector<32x128xf32>
    %c34 = arith.constant 34 : index
    %165 = memref.load %arg0[%c34] : memref<108xf32, #tpu.memory_space<smem>>
    %166 = vector.broadcast %165 : f32 to vector<32x128xf32>
    %167 = arith.mulf %166, %22 : vector<32x128xf32>
    %168 = arith.addf %164, %167 : vector<32x128xf32>
    %c35 = arith.constant 35 : index
    %169 = memref.load %arg0[%c35] : memref<108xf32, #tpu.memory_space<smem>>
    %170 = vector.broadcast %169 : f32 to vector<32x128xf32>
    %171 = arith.addf %168, %170 : vector<32x128xf32>
    %172 = arith.minimumf %151, %161 : vector<32x128xf32>
    %173 = arith.minimumf %172, %171 : vector<32x128xf32>
    %174 = arith.maximumf %151, %161 : vector<32x128xf32>
    %175 = arith.maximumf %174, %171 : vector<32x128xf32>
    %cst_11 = arith.constant 0.000000e+00 : f32
    %176 = vector.broadcast %cst_11 : f32 to vector<32x128xf32>
    %177 = arith.cmpf oge, %173, %176 : vector<32x128xf32>
    %cst_12 = arith.constant 0.000000e+00 : f32
    %178 = vector.broadcast %cst_12 : f32 to vector<32x128xf32>
    %179 = arith.cmpf ole, %175, %178 : vector<32x128xf32>
    %180 = arith.ori %177, %179 : vector<32x128xi1>
    %181 = arith.ori %141, %180 : vector<32x128xi1>
    %c36 = arith.constant 36 : index
    %182 = memref.load %arg0[%c36] : memref<108xf32, #tpu.memory_space<smem>>
    %183 = vector.broadcast %182 : f32 to vector<32x128xf32>
    %184 = arith.mulf %183, %16 : vector<32x128xf32>
    %c37 = arith.constant 37 : index
    %185 = memref.load %arg0[%c37] : memref<108xf32, #tpu.memory_space<smem>>
    %186 = vector.broadcast %185 : f32 to vector<32x128xf32>
    %187 = arith.mulf %186, %22 : vector<32x128xf32>
    %188 = arith.addf %184, %187 : vector<32x128xf32>
    %c38 = arith.constant 38 : index
    %189 = memref.load %arg0[%c38] : memref<108xf32, #tpu.memory_space<smem>>
    %190 = vector.broadcast %189 : f32 to vector<32x128xf32>
    %191 = arith.addf %188, %190 : vector<32x128xf32>
    %c39 = arith.constant 39 : index
    %192 = memref.load %arg0[%c39] : memref<108xf32, #tpu.memory_space<smem>>
    %193 = vector.broadcast %192 : f32 to vector<32x128xf32>
    %194 = arith.mulf %193, %16 : vector<32x128xf32>
    %c40 = arith.constant 40 : index
    %195 = memref.load %arg0[%c40] : memref<108xf32, #tpu.memory_space<smem>>
    %196 = vector.broadcast %195 : f32 to vector<32x128xf32>
    %197 = arith.mulf %196, %22 : vector<32x128xf32>
    %198 = arith.addf %194, %197 : vector<32x128xf32>
    %c41 = arith.constant 41 : index
    %199 = memref.load %arg0[%c41] : memref<108xf32, #tpu.memory_space<smem>>
    %200 = vector.broadcast %199 : f32 to vector<32x128xf32>
    %201 = arith.addf %198, %200 : vector<32x128xf32>
    %c42 = arith.constant 42 : index
    %202 = memref.load %arg0[%c42] : memref<108xf32, #tpu.memory_space<smem>>
    %203 = vector.broadcast %202 : f32 to vector<32x128xf32>
    %204 = arith.mulf %203, %16 : vector<32x128xf32>
    %c43 = arith.constant 43 : index
    %205 = memref.load %arg0[%c43] : memref<108xf32, #tpu.memory_space<smem>>
    %206 = vector.broadcast %205 : f32 to vector<32x128xf32>
    %207 = arith.mulf %206, %22 : vector<32x128xf32>
    %208 = arith.addf %204, %207 : vector<32x128xf32>
    %c44 = arith.constant 44 : index
    %209 = memref.load %arg0[%c44] : memref<108xf32, #tpu.memory_space<smem>>
    %210 = vector.broadcast %209 : f32 to vector<32x128xf32>
    %211 = arith.addf %208, %210 : vector<32x128xf32>
    %212 = arith.minimumf %191, %201 : vector<32x128xf32>
    %213 = arith.minimumf %212, %211 : vector<32x128xf32>
    %214 = arith.maximumf %191, %201 : vector<32x128xf32>
    %215 = arith.maximumf %214, %211 : vector<32x128xf32>
    %cst_13 = arith.constant 0.000000e+00 : f32
    %216 = vector.broadcast %cst_13 : f32 to vector<32x128xf32>
    %217 = arith.cmpf oge, %213, %216 : vector<32x128xf32>
    %cst_14 = arith.constant 0.000000e+00 : f32
    %218 = vector.broadcast %cst_14 : f32 to vector<32x128xf32>
    %219 = arith.cmpf ole, %215, %218 : vector<32x128xf32>
    %220 = arith.ori %217, %219 : vector<32x128xi1>
    %221 = arith.ori %181, %220 : vector<32x128xi1>
    %c45 = arith.constant 45 : index
    %222 = memref.load %arg0[%c45] : memref<108xf32, #tpu.memory_space<smem>>
    %223 = vector.broadcast %222 : f32 to vector<32x128xf32>
    %224 = arith.mulf %223, %16 : vector<32x128xf32>
    %c46 = arith.constant 46 : index
    %225 = memref.load %arg0[%c46] : memref<108xf32, #tpu.memory_space<smem>>
    %226 = vector.broadcast %225 : f32 to vector<32x128xf32>
    %227 = arith.mulf %226, %22 : vector<32x128xf32>
    %228 = arith.addf %224, %227 : vector<32x128xf32>
    %c47 = arith.constant 47 : index
    %229 = memref.load %arg0[%c47] : memref<108xf32, #tpu.memory_space<smem>>
    %230 = vector.broadcast %229 : f32 to vector<32x128xf32>
    %231 = arith.addf %228, %230 : vector<32x128xf32>
    %c48 = arith.constant 48 : index
    %232 = memref.load %arg0[%c48] : memref<108xf32, #tpu.memory_space<smem>>
    %233 = vector.broadcast %232 : f32 to vector<32x128xf32>
    %234 = arith.mulf %233, %16 : vector<32x128xf32>
    %c49 = arith.constant 49 : index
    %235 = memref.load %arg0[%c49] : memref<108xf32, #tpu.memory_space<smem>>
    %236 = vector.broadcast %235 : f32 to vector<32x128xf32>
    %237 = arith.mulf %236, %22 : vector<32x128xf32>
    %238 = arith.addf %234, %237 : vector<32x128xf32>
    %c50 = arith.constant 50 : index
    %239 = memref.load %arg0[%c50] : memref<108xf32, #tpu.memory_space<smem>>
    %240 = vector.broadcast %239 : f32 to vector<32x128xf32>
    %241 = arith.addf %238, %240 : vector<32x128xf32>
    %c51 = arith.constant 51 : index
    %242 = memref.load %arg0[%c51] : memref<108xf32, #tpu.memory_space<smem>>
    %243 = vector.broadcast %242 : f32 to vector<32x128xf32>
    %244 = arith.mulf %243, %16 : vector<32x128xf32>
    %c52 = arith.constant 52 : index
    %245 = memref.load %arg0[%c52] : memref<108xf32, #tpu.memory_space<smem>>
    %246 = vector.broadcast %245 : f32 to vector<32x128xf32>
    %247 = arith.mulf %246, %22 : vector<32x128xf32>
    %248 = arith.addf %244, %247 : vector<32x128xf32>
    %c53 = arith.constant 53 : index
    %249 = memref.load %arg0[%c53] : memref<108xf32, #tpu.memory_space<smem>>
    %250 = vector.broadcast %249 : f32 to vector<32x128xf32>
    %251 = arith.addf %248, %250 : vector<32x128xf32>
    %252 = arith.minimumf %231, %241 : vector<32x128xf32>
    %253 = arith.minimumf %252, %251 : vector<32x128xf32>
    %254 = arith.maximumf %231, %241 : vector<32x128xf32>
    %255 = arith.maximumf %254, %251 : vector<32x128xf32>
    %cst_15 = arith.constant 0.000000e+00 : f32
    %256 = vector.broadcast %cst_15 : f32 to vector<32x128xf32>
    %257 = arith.cmpf oge, %253, %256 : vector<32x128xf32>
    %cst_16 = arith.constant 0.000000e+00 : f32
    %258 = vector.broadcast %cst_16 : f32 to vector<32x128xf32>
    %259 = arith.cmpf ole, %255, %258 : vector<32x128xf32>
    %260 = arith.ori %257, %259 : vector<32x128xi1>
    %261 = arith.ori %221, %260 : vector<32x128xi1>
    %c54 = arith.constant 54 : index
    %262 = memref.load %arg0[%c54] : memref<108xf32, #tpu.memory_space<smem>>
    %263 = vector.broadcast %262 : f32 to vector<32x128xf32>
    %264 = arith.mulf %263, %16 : vector<32x128xf32>
    %c55 = arith.constant 55 : index
    %265 = memref.load %arg0[%c55] : memref<108xf32, #tpu.memory_space<smem>>
    %266 = vector.broadcast %265 : f32 to vector<32x128xf32>
    %267 = arith.mulf %266, %22 : vector<32x128xf32>
    %268 = arith.addf %264, %267 : vector<32x128xf32>
    %c56 = arith.constant 56 : index
    %269 = memref.load %arg0[%c56] : memref<108xf32, #tpu.memory_space<smem>>
    %270 = vector.broadcast %269 : f32 to vector<32x128xf32>
    %271 = arith.addf %268, %270 : vector<32x128xf32>
    %c57 = arith.constant 57 : index
    %272 = memref.load %arg0[%c57] : memref<108xf32, #tpu.memory_space<smem>>
    %273 = vector.broadcast %272 : f32 to vector<32x128xf32>
    %274 = arith.mulf %273, %16 : vector<32x128xf32>
    %c58 = arith.constant 58 : index
    %275 = memref.load %arg0[%c58] : memref<108xf32, #tpu.memory_space<smem>>
    %276 = vector.broadcast %275 : f32 to vector<32x128xf32>
    %277 = arith.mulf %276, %22 : vector<32x128xf32>
    %278 = arith.addf %274, %277 : vector<32x128xf32>
    %c59 = arith.constant 59 : index
    %279 = memref.load %arg0[%c59] : memref<108xf32, #tpu.memory_space<smem>>
    %280 = vector.broadcast %279 : f32 to vector<32x128xf32>
    %281 = arith.addf %278, %280 : vector<32x128xf32>
    %c60 = arith.constant 60 : index
    %282 = memref.load %arg0[%c60] : memref<108xf32, #tpu.memory_space<smem>>
    %283 = vector.broadcast %282 : f32 to vector<32x128xf32>
    %284 = arith.mulf %283, %16 : vector<32x128xf32>
    %c61 = arith.constant 61 : index
    %285 = memref.load %arg0[%c61] : memref<108xf32, #tpu.memory_space<smem>>
    %286 = vector.broadcast %285 : f32 to vector<32x128xf32>
    %287 = arith.mulf %286, %22 : vector<32x128xf32>
    %288 = arith.addf %284, %287 : vector<32x128xf32>
    %c62 = arith.constant 62 : index
    %289 = memref.load %arg0[%c62] : memref<108xf32, #tpu.memory_space<smem>>
    %290 = vector.broadcast %289 : f32 to vector<32x128xf32>
    %291 = arith.addf %288, %290 : vector<32x128xf32>
    %292 = arith.minimumf %271, %281 : vector<32x128xf32>
    %293 = arith.minimumf %292, %291 : vector<32x128xf32>
    %294 = arith.maximumf %271, %281 : vector<32x128xf32>
    %295 = arith.maximumf %294, %291 : vector<32x128xf32>
    %cst_17 = arith.constant 0.000000e+00 : f32
    %296 = vector.broadcast %cst_17 : f32 to vector<32x128xf32>
    %297 = arith.cmpf oge, %293, %296 : vector<32x128xf32>
    %cst_18 = arith.constant 0.000000e+00 : f32
    %298 = vector.broadcast %cst_18 : f32 to vector<32x128xf32>
    %299 = arith.cmpf ole, %295, %298 : vector<32x128xf32>
    %300 = arith.ori %297, %299 : vector<32x128xi1>
    %301 = arith.ori %261, %300 : vector<32x128xi1>
    %c63 = arith.constant 63 : index
    %302 = memref.load %arg0[%c63] : memref<108xf32, #tpu.memory_space<smem>>
    %303 = vector.broadcast %302 : f32 to vector<32x128xf32>
    %304 = arith.mulf %303, %16 : vector<32x128xf32>
    %c64 = arith.constant 64 : index
    %305 = memref.load %arg0[%c64] : memref<108xf32, #tpu.memory_space<smem>>
    %306 = vector.broadcast %305 : f32 to vector<32x128xf32>
    %307 = arith.mulf %306, %22 : vector<32x128xf32>
    %308 = arith.addf %304, %307 : vector<32x128xf32>
    %c65 = arith.constant 65 : index
    %309 = memref.load %arg0[%c65] : memref<108xf32, #tpu.memory_space<smem>>
    %310 = vector.broadcast %309 : f32 to vector<32x128xf32>
    %311 = arith.addf %308, %310 : vector<32x128xf32>
    %c66 = arith.constant 66 : index
    %312 = memref.load %arg0[%c66] : memref<108xf32, #tpu.memory_space<smem>>
    %313 = vector.broadcast %312 : f32 to vector<32x128xf32>
    %314 = arith.mulf %313, %16 : vector<32x128xf32>
    %c67 = arith.constant 67 : index
    %315 = memref.load %arg0[%c67] : memref<108xf32, #tpu.memory_space<smem>>
    %316 = vector.broadcast %315 : f32 to vector<32x128xf32>
    %317 = arith.mulf %316, %22 : vector<32x128xf32>
    %318 = arith.addf %314, %317 : vector<32x128xf32>
    %c68 = arith.constant 68 : index
    %319 = memref.load %arg0[%c68] : memref<108xf32, #tpu.memory_space<smem>>
    %320 = vector.broadcast %319 : f32 to vector<32x128xf32>
    %321 = arith.addf %318, %320 : vector<32x128xf32>
    %c69 = arith.constant 69 : index
    %322 = memref.load %arg0[%c69] : memref<108xf32, #tpu.memory_space<smem>>
    %323 = vector.broadcast %322 : f32 to vector<32x128xf32>
    %324 = arith.mulf %323, %16 : vector<32x128xf32>
    %c70 = arith.constant 70 : index
    %325 = memref.load %arg0[%c70] : memref<108xf32, #tpu.memory_space<smem>>
    %326 = vector.broadcast %325 : f32 to vector<32x128xf32>
    %327 = arith.mulf %326, %22 : vector<32x128xf32>
    %328 = arith.addf %324, %327 : vector<32x128xf32>
    %c71 = arith.constant 71 : index
    %329 = memref.load %arg0[%c71] : memref<108xf32, #tpu.memory_space<smem>>
    %330 = vector.broadcast %329 : f32 to vector<32x128xf32>
    %331 = arith.addf %328, %330 : vector<32x128xf32>
    %332 = arith.minimumf %311, %321 : vector<32x128xf32>
    %333 = arith.minimumf %332, %331 : vector<32x128xf32>
    %334 = arith.maximumf %311, %321 : vector<32x128xf32>
    %335 = arith.maximumf %334, %331 : vector<32x128xf32>
    %cst_19 = arith.constant 0.000000e+00 : f32
    %336 = vector.broadcast %cst_19 : f32 to vector<32x128xf32>
    %337 = arith.cmpf oge, %333, %336 : vector<32x128xf32>
    %cst_20 = arith.constant 0.000000e+00 : f32
    %338 = vector.broadcast %cst_20 : f32 to vector<32x128xf32>
    %339 = arith.cmpf ole, %335, %338 : vector<32x128xf32>
    %340 = arith.ori %337, %339 : vector<32x128xi1>
    %341 = arith.ori %301, %340 : vector<32x128xi1>
    %c72 = arith.constant 72 : index
    %342 = memref.load %arg0[%c72] : memref<108xf32, #tpu.memory_space<smem>>
    %343 = vector.broadcast %342 : f32 to vector<32x128xf32>
    %344 = arith.mulf %343, %16 : vector<32x128xf32>
    %c73 = arith.constant 73 : index
    %345 = memref.load %arg0[%c73] : memref<108xf32, #tpu.memory_space<smem>>
    %346 = vector.broadcast %345 : f32 to vector<32x128xf32>
    %347 = arith.mulf %346, %22 : vector<32x128xf32>
    %348 = arith.addf %344, %347 : vector<32x128xf32>
    %c74 = arith.constant 74 : index
    %349 = memref.load %arg0[%c74] : memref<108xf32, #tpu.memory_space<smem>>
    %350 = vector.broadcast %349 : f32 to vector<32x128xf32>
    %351 = arith.addf %348, %350 : vector<32x128xf32>
    %c75 = arith.constant 75 : index
    %352 = memref.load %arg0[%c75] : memref<108xf32, #tpu.memory_space<smem>>
    %353 = vector.broadcast %352 : f32 to vector<32x128xf32>
    %354 = arith.mulf %353, %16 : vector<32x128xf32>
    %c76 = arith.constant 76 : index
    %355 = memref.load %arg0[%c76] : memref<108xf32, #tpu.memory_space<smem>>
    %356 = vector.broadcast %355 : f32 to vector<32x128xf32>
    %357 = arith.mulf %356, %22 : vector<32x128xf32>
    %358 = arith.addf %354, %357 : vector<32x128xf32>
    %c77 = arith.constant 77 : index
    %359 = memref.load %arg0[%c77] : memref<108xf32, #tpu.memory_space<smem>>
    %360 = vector.broadcast %359 : f32 to vector<32x128xf32>
    %361 = arith.addf %358, %360 : vector<32x128xf32>
    %c78 = arith.constant 78 : index
    %362 = memref.load %arg0[%c78] : memref<108xf32, #tpu.memory_space<smem>>
    %363 = vector.broadcast %362 : f32 to vector<32x128xf32>
    %364 = arith.mulf %363, %16 : vector<32x128xf32>
    %c79 = arith.constant 79 : index
    %365 = memref.load %arg0[%c79] : memref<108xf32, #tpu.memory_space<smem>>
    %366 = vector.broadcast %365 : f32 to vector<32x128xf32>
    %367 = arith.mulf %366, %22 : vector<32x128xf32>
    %368 = arith.addf %364, %367 : vector<32x128xf32>
    %c80 = arith.constant 80 : index
    %369 = memref.load %arg0[%c80] : memref<108xf32, #tpu.memory_space<smem>>
    %370 = vector.broadcast %369 : f32 to vector<32x128xf32>
    %371 = arith.addf %368, %370 : vector<32x128xf32>
    %372 = arith.minimumf %351, %361 : vector<32x128xf32>
    %373 = arith.minimumf %372, %371 : vector<32x128xf32>
    %374 = arith.maximumf %351, %361 : vector<32x128xf32>
    %375 = arith.maximumf %374, %371 : vector<32x128xf32>
    %cst_21 = arith.constant 0.000000e+00 : f32
    %376 = vector.broadcast %cst_21 : f32 to vector<32x128xf32>
    %377 = arith.cmpf oge, %373, %376 : vector<32x128xf32>
    %cst_22 = arith.constant 0.000000e+00 : f32
    %378 = vector.broadcast %cst_22 : f32 to vector<32x128xf32>
    %379 = arith.cmpf ole, %375, %378 : vector<32x128xf32>
    %380 = arith.ori %377, %379 : vector<32x128xi1>
    %381 = arith.ori %341, %380 : vector<32x128xi1>
    %c81 = arith.constant 81 : index
    %382 = memref.load %arg0[%c81] : memref<108xf32, #tpu.memory_space<smem>>
    %383 = vector.broadcast %382 : f32 to vector<32x128xf32>
    %384 = arith.mulf %383, %16 : vector<32x128xf32>
    %c82 = arith.constant 82 : index
    %385 = memref.load %arg0[%c82] : memref<108xf32, #tpu.memory_space<smem>>
    %386 = vector.broadcast %385 : f32 to vector<32x128xf32>
    %387 = arith.mulf %386, %22 : vector<32x128xf32>
    %388 = arith.addf %384, %387 : vector<32x128xf32>
    %c83 = arith.constant 83 : index
    %389 = memref.load %arg0[%c83] : memref<108xf32, #tpu.memory_space<smem>>
    %390 = vector.broadcast %389 : f32 to vector<32x128xf32>
    %391 = arith.addf %388, %390 : vector<32x128xf32>
    %c84 = arith.constant 84 : index
    %392 = memref.load %arg0[%c84] : memref<108xf32, #tpu.memory_space<smem>>
    %393 = vector.broadcast %392 : f32 to vector<32x128xf32>
    %394 = arith.mulf %393, %16 : vector<32x128xf32>
    %c85 = arith.constant 85 : index
    %395 = memref.load %arg0[%c85] : memref<108xf32, #tpu.memory_space<smem>>
    %396 = vector.broadcast %395 : f32 to vector<32x128xf32>
    %397 = arith.mulf %396, %22 : vector<32x128xf32>
    %398 = arith.addf %394, %397 : vector<32x128xf32>
    %c86 = arith.constant 86 : index
    %399 = memref.load %arg0[%c86] : memref<108xf32, #tpu.memory_space<smem>>
    %400 = vector.broadcast %399 : f32 to vector<32x128xf32>
    %401 = arith.addf %398, %400 : vector<32x128xf32>
    %c87 = arith.constant 87 : index
    %402 = memref.load %arg0[%c87] : memref<108xf32, #tpu.memory_space<smem>>
    %403 = vector.broadcast %402 : f32 to vector<32x128xf32>
    %404 = arith.mulf %403, %16 : vector<32x128xf32>
    %c88 = arith.constant 88 : index
    %405 = memref.load %arg0[%c88] : memref<108xf32, #tpu.memory_space<smem>>
    %406 = vector.broadcast %405 : f32 to vector<32x128xf32>
    %407 = arith.mulf %406, %22 : vector<32x128xf32>
    %408 = arith.addf %404, %407 : vector<32x128xf32>
    %c89 = arith.constant 89 : index
    %409 = memref.load %arg0[%c89] : memref<108xf32, #tpu.memory_space<smem>>
    %410 = vector.broadcast %409 : f32 to vector<32x128xf32>
    %411 = arith.addf %408, %410 : vector<32x128xf32>
    %412 = arith.minimumf %391, %401 : vector<32x128xf32>
    %413 = arith.minimumf %412, %411 : vector<32x128xf32>
    %414 = arith.maximumf %391, %401 : vector<32x128xf32>
    %415 = arith.maximumf %414, %411 : vector<32x128xf32>
    %cst_23 = arith.constant 0.000000e+00 : f32
    %416 = vector.broadcast %cst_23 : f32 to vector<32x128xf32>
    %417 = arith.cmpf oge, %413, %416 : vector<32x128xf32>
    %cst_24 = arith.constant 0.000000e+00 : f32
    %418 = vector.broadcast %cst_24 : f32 to vector<32x128xf32>
    %419 = arith.cmpf ole, %415, %418 : vector<32x128xf32>
    %420 = arith.ori %417, %419 : vector<32x128xi1>
    %421 = arith.ori %381, %420 : vector<32x128xi1>
    %c90 = arith.constant 90 : index
    %422 = memref.load %arg0[%c90] : memref<108xf32, #tpu.memory_space<smem>>
    %423 = vector.broadcast %422 : f32 to vector<32x128xf32>
    %424 = arith.mulf %423, %16 : vector<32x128xf32>
    %c91 = arith.constant 91 : index
    %425 = memref.load %arg0[%c91] : memref<108xf32, #tpu.memory_space<smem>>
    %426 = vector.broadcast %425 : f32 to vector<32x128xf32>
    %427 = arith.mulf %426, %22 : vector<32x128xf32>
    %428 = arith.addf %424, %427 : vector<32x128xf32>
    %c92 = arith.constant 92 : index
    %429 = memref.load %arg0[%c92] : memref<108xf32, #tpu.memory_space<smem>>
    %430 = vector.broadcast %429 : f32 to vector<32x128xf32>
    %431 = arith.addf %428, %430 : vector<32x128xf32>
    %c93 = arith.constant 93 : index
    %432 = memref.load %arg0[%c93] : memref<108xf32, #tpu.memory_space<smem>>
    %433 = vector.broadcast %432 : f32 to vector<32x128xf32>
    %434 = arith.mulf %433, %16 : vector<32x128xf32>
    %c94 = arith.constant 94 : index
    %435 = memref.load %arg0[%c94] : memref<108xf32, #tpu.memory_space<smem>>
    %436 = vector.broadcast %435 : f32 to vector<32x128xf32>
    %437 = arith.mulf %436, %22 : vector<32x128xf32>
    %438 = arith.addf %434, %437 : vector<32x128xf32>
    %c95 = arith.constant 95 : index
    %439 = memref.load %arg0[%c95] : memref<108xf32, #tpu.memory_space<smem>>
    %440 = vector.broadcast %439 : f32 to vector<32x128xf32>
    %441 = arith.addf %438, %440 : vector<32x128xf32>
    %c96 = arith.constant 96 : index
    %442 = memref.load %arg0[%c96] : memref<108xf32, #tpu.memory_space<smem>>
    %443 = vector.broadcast %442 : f32 to vector<32x128xf32>
    %444 = arith.mulf %443, %16 : vector<32x128xf32>
    %c97 = arith.constant 97 : index
    %445 = memref.load %arg0[%c97] : memref<108xf32, #tpu.memory_space<smem>>
    %446 = vector.broadcast %445 : f32 to vector<32x128xf32>
    %447 = arith.mulf %446, %22 : vector<32x128xf32>
    %448 = arith.addf %444, %447 : vector<32x128xf32>
    %c98 = arith.constant 98 : index
    %449 = memref.load %arg0[%c98] : memref<108xf32, #tpu.memory_space<smem>>
    %450 = vector.broadcast %449 : f32 to vector<32x128xf32>
    %451 = arith.addf %448, %450 : vector<32x128xf32>
    %452 = arith.minimumf %431, %441 : vector<32x128xf32>
    %453 = arith.minimumf %452, %451 : vector<32x128xf32>
    %454 = arith.maximumf %431, %441 : vector<32x128xf32>
    %455 = arith.maximumf %454, %451 : vector<32x128xf32>
    %cst_25 = arith.constant 0.000000e+00 : f32
    %456 = vector.broadcast %cst_25 : f32 to vector<32x128xf32>
    %457 = arith.cmpf oge, %453, %456 : vector<32x128xf32>
    %cst_26 = arith.constant 0.000000e+00 : f32
    %458 = vector.broadcast %cst_26 : f32 to vector<32x128xf32>
    %459 = arith.cmpf ole, %455, %458 : vector<32x128xf32>
    %460 = arith.ori %457, %459 : vector<32x128xi1>
    %461 = arith.ori %421, %460 : vector<32x128xi1>
    %c99 = arith.constant 99 : index
    %462 = memref.load %arg0[%c99] : memref<108xf32, #tpu.memory_space<smem>>
    %463 = vector.broadcast %462 : f32 to vector<32x128xf32>
    %464 = arith.mulf %463, %16 : vector<32x128xf32>
    %c100 = arith.constant 100 : index
    %465 = memref.load %arg0[%c100] : memref<108xf32, #tpu.memory_space<smem>>
    %466 = vector.broadcast %465 : f32 to vector<32x128xf32>
    %467 = arith.mulf %466, %22 : vector<32x128xf32>
    %468 = arith.addf %464, %467 : vector<32x128xf32>
    %c101 = arith.constant 101 : index
    %469 = memref.load %arg0[%c101] : memref<108xf32, #tpu.memory_space<smem>>
    %470 = vector.broadcast %469 : f32 to vector<32x128xf32>
    %471 = arith.addf %468, %470 : vector<32x128xf32>
    %c102 = arith.constant 102 : index
    %472 = memref.load %arg0[%c102] : memref<108xf32, #tpu.memory_space<smem>>
    %473 = vector.broadcast %472 : f32 to vector<32x128xf32>
    %474 = arith.mulf %473, %16 : vector<32x128xf32>
    %c103 = arith.constant 103 : index
    %475 = memref.load %arg0[%c103] : memref<108xf32, #tpu.memory_space<smem>>
    %476 = vector.broadcast %475 : f32 to vector<32x128xf32>
    %477 = arith.mulf %476, %22 : vector<32x128xf32>
    %478 = arith.addf %474, %477 : vector<32x128xf32>
    %c104 = arith.constant 104 : index
    %479 = memref.load %arg0[%c104] : memref<108xf32, #tpu.memory_space<smem>>
    %480 = vector.broadcast %479 : f32 to vector<32x128xf32>
    %481 = arith.addf %478, %480 : vector<32x128xf32>
    %c105 = arith.constant 105 : index
    %482 = memref.load %arg0[%c105] : memref<108xf32, #tpu.memory_space<smem>>
    %483 = vector.broadcast %482 : f32 to vector<32x128xf32>
    %484 = arith.mulf %483, %16 : vector<32x128xf32>
    %c106 = arith.constant 106 : index
    %485 = memref.load %arg0[%c106] : memref<108xf32, #tpu.memory_space<smem>>
    %486 = vector.broadcast %485 : f32 to vector<32x128xf32>
    %487 = arith.mulf %486, %22 : vector<32x128xf32>
    %488 = arith.addf %484, %487 : vector<32x128xf32>
    %c107 = arith.constant 107 : index
    %489 = memref.load %arg0[%c107] : memref<108xf32, #tpu.memory_space<smem>>
    %490 = vector.broadcast %489 : f32 to vector<32x128xf32>
    %491 = arith.addf %488, %490 : vector<32x128xf32>
    %492 = arith.minimumf %471, %481 : vector<32x128xf32>
    %493 = arith.minimumf %492, %491 : vector<32x128xf32>
    %494 = arith.maximumf %471, %481 : vector<32x128xf32>
    %495 = arith.maximumf %494, %491 : vector<32x128xf32>
    %cst_27 = arith.constant 0.000000e+00 : f32
    %496 = vector.broadcast %cst_27 : f32 to vector<32x128xf32>
    %497 = arith.cmpf oge, %493, %496 : vector<32x128xf32>
    %cst_28 = arith.constant 0.000000e+00 : f32
    %498 = vector.broadcast %cst_28 : f32 to vector<32x128xf32>
    %499 = arith.cmpf ole, %495, %498 : vector<32x128xf32>
    %500 = arith.ori %497, %499 : vector<32x128xi1>
    %501 = arith.ori %461, %500 : vector<32x128xi1>
    %502 = arith.extui %501 : vector<32x128xi1> to vector<32x128xi32>
    %503 = arith.sitofp %502 : vector<32x128xi32> to vector<32x128xf32>
    %c0_29 = arith.constant 0 : index
    %c0_30 = arith.constant 0 : index
    %504 = vector.load %arg2[%c0_29, %c0_30] : memref<32x128xf32, #tpu.memory_space<vmem>>, vector<32x128xf32>
    tpu.vector_store %arg2[%c0_29, %c0_30], %503 {strides = array<i32>} : memref<32x128xf32, #tpu.memory_space<vmem>>, vector<32x128xf32>,
    %c0_31 = arith.constant 0 : index
    %c0_32 = arith.constant 0 : index
    %505 = vector.load %arg1[%c0_31, %c0_32] : memref<32x128xf32, #tpu.memory_space<vmem>>, vector<32x128xf32>
    %506 = arith.subf %503, %505 : vector<32x128xf32>
    %507 = arith.mulf %506, %506 : vector<32x128xf32>
    %508 = vector.shape_cast %507 : vector<32x128xf32> to vector<1x32x128xf32>
    %cst_33 = arith.constant dense<0.000000e+00> : vector<1xf32>
    %509 = vector.multi_reduction <add>, %508, %cst_33 [1, 2] : vector<1x32x128xf32> to vector<1xf32>
    %510 = vector.shape_cast %509 : vector<1xf32> to vector<1x1x1xf32>
    %511 = vector.extract %510[0, 0, 0] : f32 from vector<1x1x1xf32>
    %c0_34 = arith.constant 0 : index
    %c0_35 = arith.constant 0 : index
    %512 = memref.load %arg3[%c0_34, %c0_35] : memref<1x1xf32, #tpu.memory_space<smem>>
    memref.store %511, %arg3[%c0_34, %c0_35] : memref<1x1xf32, #tpu.memory_space<smem>>
    return
  }
}

</mosaic_0001>

<bundles_post_ra>
// kernel: _lambda_.1
= control target key start
LH: loop header
LB: loop body
LE: loop exit
PB: predicated region body
PF: predicated region fallthrough
CT: control target
= control target key end

     0   :  { %9 = vsyncpa [#allocation4], 0  ;;  %s3216_s0 = inlined_call_operand.vmem [shape: f32[108], index: 0, kind: input, shape index: {}]   ;;  %s3217_s1 = inlined_call_operand.vmem [shape: f32[32,128], index: 1, kind: input, shape index: {}]   ;;  %s3218_s2 = inlined_call_operand.vmem [shape: f32[32,128], index: 2, kind: output, shape index: {0}]   ;;  %s3219_s3 = inlined_call_operand.hbm [shape: f32[1,1], index: 3, kind: output, shape index: {1}]  }
   0x1   :  { %10 = vsyncpa [#allocation3], 0  ;;  %s17_s14 = sshll.u32 %s3216_s0, 4  ;;  %s18_s14 = int_to_ptr.vmem [resolvable:$true] %s17_s14 }
   0x2   :  { %s1301_s15 = scalar_lea.vmem %s18_s14, 16  ;;  %p1306_p1 = scmp.lt.s32.totalorder %s18_s14, %s18_s14 }
   0x3   :  { %p1302_p0 = scmp.ne.s32.totalorder %s18_s14, %s1301_s15  ;;  %p1307_p2 = scmp.lt.s32.totalorder %s1301_s15, %s1301_s15 }
   0x5   :  { %p1308_p3 = por %p1307_p2, %p1306_p1 }
   0x7   :  { %p1309_p4 = pnand %p1308_p3, %p1302_p0 }
   0x9   :  { %1312 = shalt.err (!%p1309_p4)
}
   0xa   :  { %s1325_s16 = smov [#allocation2]  }
   0xb   :  { %20 = dma.vmem_to_smem %s18_s14, 16, %s1325_s16, [#allocation4]  }
   0xc   :  { %1321 = dma.done.wait [#allocation4], 16  }
   0xd   :  { %1322 = vsyncadd [#allocation4], 4294967280 }
   0xe   :  { %26 = sfence }
   0xf   :  { %v27_v0 = vlaneseq  ;;  %s64_s0 = sld [smem:[#allocation2]] }
  0x10   :  { %s1185_s17 = sld [smem:[#allocation2 + $0x1]] }
  0x11   :  { %v28_v1 = vshrl.u32 %v27_v0, 7  ;;  %v33_v2 = vand.u32 127, %v27_v0  ;;  %s1187_s18 = sld [smem:[#allocation2 + $0x3]] }
  0x12   :  { %s1188_s19 = sld [smem:[#allocation2 + $0x4]] }
  0x13   :  { %v29_v3 = vadd.s32 8, %v28_v1  ;;  %v30_v4 = vadd.s32 16, %v28_v1  ;;  %v31_v5 = vadd.s32 24, %v28_v1  ;;  %v34_v6 = vmul.u32 2, %v28_v1  ;;  %s1186_s20 = sld [smem:[#allocation2 + $0x2]] }
  0x14   :  { %v38_v7 = vshra.s32 %v33_v2, 6  ;;  %v43_v12 = vand.u32 63, %v33_v2  ;;  %s1351_s21 = sld [smem:[#allocation2 + $0x6]] }
  0x15   :  { %v35_v8 = vmul.u32 2, %v29_v3  ;;  %v36_v9 = vmul.u32 2, %v30_v4  ;;  %s1191_s22 = sld [smem:[#allocation2 + $0x7]]  ;;  %v65_v33 = vstv %s64_s0 }
  0x16   :  { %v37_v10 = vmul.u32 2, %v31_v5  ;;  %v39_v11 = vadd.s32 %v38_v7, %v34_v6  ;;  %v48_v17 = vcvt.s32.f32 %v43_v12  ;;  %v68_v34 = vstv %s1185_s17  ;;  %s1189_s23 = sld [smem:[#allocation2 + $0x5]] }
  0x17   :  { %v40_v13 = vadd.s32 %v38_v7, %v35_v8  ;;  %v41_v14 = vadd.s32 %v38_v7, %v36_v9  ;;  %v84_v37 = vstv %s1187_s18  ;;  %s1192_s24 = sld [smem:[#allocation2 + $0x8]] }
  0x18   :  { %v42_v15 = vadd.s32 %v38_v7, %v37_v10  ;;  %v44_v16 = vcvt.s32.f32 %v39_v11  ;;  %v49_v21 = vadd.f32 0.5, %v48_v17  ;;  %v87_v38 = vstv %s1188_s19  ;;  %s1374_s25 = sld [smem:[#allocation2 + $0x9]] }
  0x19   :  { %v45_v18 = vcvt.s32.f32 %v40_v13  ;;  %v46_v19 = vcvt.s32.f32 %v41_v14  ;;  %v78_v53 = vstv %s1186_s20  ;;  %s1376_s26 = sld [smem:[#allocation2 + $0xa]] }
  0x1a   :  { %v47_v20 = vcvt.s32.f32 %v42_v15  ;;  %v52_v22 = vadd.f32 0.5, %v44_v16  ;;  %v50_v26 = vmul.f32 0.03125, %v49_v21  ;;  %v103_v50 = vstv %s1351_s21  ;;  %s1380_s27 = sld [smem:[#allocation2 + $0xc]] }
  0x1b   :  { %v53_v23 = vadd.f32 0.5, %v45_v18  ;;  %v54_v24 = vadd.f32 0.5, %v46_v19  ;;  %v106_v51 = vstv %s1191_s22  ;;  %s1382_s28 = sld [smem:[#allocation2 + $0xd]] }
  0x1c   :  { %v55_v25 = vadd.f32 0.5, %v47_v20  ;;  %v56_v27 = vmul.f32 0.03125, %v52_v22  ;;  %v1353_v31 = vadd.f32 -1.0, %v50_v26  ;;  %v97_v55 = vstv %s1189_s23  ;;  %s1399_s29 = sld [smem:[#allocation2 + $0xf]] }
  0x1d   :  { %v57_v28 = vmul.f32 0.03125, %v53_v23  ;;  %v58_v29 = vmul.f32 0.03125, %v54_v24  ;;  %v116_v12 = vstv %s1192_s24  ;;  %s1401_s30 = sld [smem:[#allocation2 + $0x10]] }
  0x1e   :  { %v59_v30 = vmul.f32 0.03125, %v55_v25  ;;  %v1355_v32 = vsub.f32 1.0, %v56_v27  ;;  %v66_v40 = vmul.f32 %v1353_v31, %v65_v33  ;;  %v85_v42 = vmul.f32 %v1353_v31, %v84_v37  ;;  %s1408_s4 = sld [smem:[#allocation2 + $0xb]] }
  0x1f   :  { %v1357_v35 = vsub.f32 1.0, %v57_v28  ;;  %v1359_v36 = vsub.f32 1.0, %v58_v29  ;;  %v104_v62 = vmul.f32 %v1353_v31, %v103_v50  ;;  %v150_v18 = vstv %s1374_s25  ;;  %s1413_s5 = sld [smem:[#allocation2 + $0xe]] }
  0x20   :  { %v1361_v39 = vsub.f32 1.0, %v59_v30  ;;  %v69_v41 = vmul.f32 %v68_v34, %v1355_v32  ;;  %v88_v43 = vmul.f32 %v87_v38, %v1355_v32  ;;  %v107_v63 = vmul.f32 %v106_v51, %v1355_v32  ;;  %s1427_s6 = sld [smem:[#allocation2 + $0x11]] }
  0x21   :  { %v70_v44 = vmul.f32 %v68_v34, %v1357_v35  ;;  %v71_v45 = vmul.f32 %v68_v34, %v1359_v36  ;;  %v89_v46 = vmul.f32 %v87_v38, %v1357_v35  ;;  %v90_v47 = vmul.f32 %v87_v38, %v1359_v36  ;;  %s1433_s7 = sld [smem:[#allocation2 + $0x12]] }
  0x22   :  { %v72_v48 = vmul.f32 %v68_v34, %v1361_v39  ;;  %v91_v49 = vmul.f32 %v87_v38, %v1361_v39  ;;  %v73_v52 = vadd.f32 %v69_v41, %v66_v40  ;;  %v92_v54 = vadd.f32 %v88_v43, %v85_v42  ;;  %s1439_s8 = sld [smem:[#allocation2 + $0x13]] }
  0x23   :  { %v74_v56 = vadd.f32 %v70_v44, %v66_v40  ;;  %v75_v57 = vadd.f32 %v71_v45, %v66_v40  ;;  %v93_v58 = vadd.f32 %v89_v46, %v85_v42  ;;  %v94_v59 = vadd.f32 %v90_v47, %v85_v42  ;;  %s1447_s9 = sld [smem:[#allocation2 + $0x15]] }
  0x24   :  { %v76_v60 = vadd.f32 %v72_v48, %v66_v40  ;;  %v95_v61 = vadd.f32 %v91_v49, %v85_v42  ;;  %v79_v0 = vadd.f32 %v78_v53, %v73_v52  ;;  %v98_v1 = vadd.f32 %v97_v55, %v92_v54  ;;  %s1450_s10 = sld [smem:[#allocation2 + $0x16]] }
  0x25   :  { %v108_v2 = vmul.f32 %v106_v51, %v1357_v35  ;;  %v109_v3 = vmul.f32 %v106_v51, %v1359_v36  ;;  %v1386_v4 = vadd.f32 %v78_v53, %v74_v56  ;;  %v1388_v5 = vadd.f32 %v78_v53, %v75_v57  ;;  %s1482_s11 = sld [smem:[#allocation2 + $0x14]] }
  0x26   :  { %v1390_v6 = vadd.f32 %v97_v55, %v93_v58  ;;  %v1392_v7 = vadd.f32 %v97_v55, %v94_v59  ;;  %v1394_v8 = vadd.f32 %v78_v53, %v76_v60  ;;  %v1396_v9 = vadd.f32 %v97_v55, %v95_v61  ;;  %s1488_s12 = sld [smem:[#allocation2 + $0x17]] }
  0x27   :  { %v110_v10 = vmul.f32 %v106_v51, %v1361_v39  ;;  %v111_v11 = vadd.f32 %v107_v63, %v104_v62  ;;  %v112_v13 = vadd.f32 %v108_v2, %v104_v62  ;;  %v113_v14 = vadd.f32 %v109_v3, %v104_v62  ;;  %s1493_s13 = sld [smem:[#allocation2 + $0x18]] }
  0x28   :  { %v121_v15 = vmin.f32 %v79_v0, %v98_v1  ;;  %v122_v16 = vmin.f32 %v1386_v4, %v1390_v6  ;;  %v123_v17 = vmin.f32 %v1388_v5, %v1392_v7  ;;  %v124_v21 = vmin.f32 %v1394_v8, %v1396_v9  ;;  %s1501_s14 = sld [smem:[#allocation2 + $0x19]] }
  0x29   :  { %v114_v19 = vadd.f32 %v110_v10, %v104_v62  ;;  %v117_v20 = vadd.f32 %v116_v12, %v111_v11  ;;  %v153_v22 = vstv %s1376_s26  ;;  %v129_v23 = vmax.f32 %v79_v0, %v98_v1  ;;  %s1515_s15 = sld [smem:[#allocation2 + $0x1a]] }
  0x2a   :  { %v130_v24 = vmax.f32 %v1386_v4, %v1390_v6  ;;  %v169_v25 = vstv %s1380_s27  ;;  %v172_v26 = vstv %s1382_s28  ;;  %v118_v27 = vadd.f32 %v116_v12, %v112_v13  ;;  %s1521_s16 = sld [smem:[#allocation2 + $0x1b]] }
  0x2b   :  { %v119_v28 = vadd.f32 %v116_v12, %v113_v14  ;;  %v131_v29 = vmax.f32 %v1388_v5, %v1392_v7  ;;  %v132_v30 = vmax.f32 %v1394_v8, %v1396_v9  ;;  %v151_v33 = vmul.f32 %v1353_v31, %v150_v18  ;;  %s1528_s0 = sld [smem:[#allocation2 + $0x1c]] }
  0x2c   :  { %v154_v34 = vmul.f32 %v153_v22, %v1355_v32  ;;  %v155_v37 = vmul.f32 %v153_v22, %v1357_v35  ;;  %v156_v38 = vmul.f32 %v153_v22, %v1359_v36  ;;  %v170_v40 = vmul.f32 %v1353_v31, %v169_v25  ;;  %s1532_s17 = sld [smem:[#allocation2 + $0x1e]] }
  0x2d   :  { %v173_v41 = vmul.f32 %v172_v26, %v1355_v32  ;;  %v174_v42 = vmul.f32 %v172_v26, %v1357_v35  ;;  %v175_v43 = vmul.f32 %v172_v26, %v1359_v36  ;;  %v120_v44 = vadd.f32 %v116_v12, %v114_v19  ;;  %s1539_s18 = sld [smem:[#allocation2 + $0x1f]] }
  0x2e   :  { %v1435_v45 = vmin.f32 %v121_v15, %v117_v20  ;;  %v157_v46 = vmul.f32 %v153_v22, %v1361_v39  ;;  %v176_v47 = vmul.f32 %v172_v26, %v1361_v39  ;;  %v1441_v48 = vmin.f32 %v122_v16, %v118_v27  ;;  %s1574_s19 = sld [smem:[#allocation2 + $0x1d]] }
  0x2f   :  { %v1443_v49 = vmax.f32 %v129_v23, %v117_v20  ;;  %v188_v50 = vstv %s1399_s29  ;;  %v191_v51 = vstv %s1401_s30  ;;  %v158_v52 = vadd.f32 %v154_v34, %v151_v33  ;;  %s1581_s20 = sld [smem:[#allocation2 + $0x20]] }
  0x30   :  { %v159_v53 = vadd.f32 %v155_v37, %v151_v33  ;;  %v160_v54 = vadd.f32 %v156_v38, %v151_v33  ;;  %v163_v55 = vstv %s1408_s4  ;;  %v177_v56 = vadd.f32 %v173_v41, %v170_v40  ;;  %s1585_s21 = sld [smem:[#allocation2 + $0x21]] }
  0x31   :  { %v178_v57 = vadd.f32 %v174_v42, %v170_v40  ;;  %v179_v58 = vadd.f32 %v175_v43, %v170_v40  ;;  %v182_v59 = vstv %s1413_s5  ;;  %v161_v60 = vadd.f32 %v157_v46, %v151_v33  ;;  %s1591_s22 = sld [smem:[#allocation2 + $0x22]] }
  0x32   :  { %v180_v61 = vadd.f32 %v176_v47, %v170_v40  ;;  %v189_v62 = vmul.f32 %v1353_v31, %v188_v50  ;;  %v192_v63 = vmul.f32 %v191_v51, %v1355_v32  ;;  %v1455_v0 = vmin.f32 %v123_v17, %v119_v28  ;;  %s1606_s23 = sld [smem:[#allocation2 + $0x23]] }
  0x33   :  { %v1457_v1 = vmax.f32 %v130_v24, %v118_v27  ;;  %v1459_v2 = vmax.f32 %v131_v29, %v119_v28  ;;  %v193_v3 = vmul.f32 %v191_v51, %v1357_v35  ;;  %v1462_v4 = vadd.f32 %v163_v55, %v158_v52  ;;  %s1611_s24 = sld [smem:[#allocation2 + $0x24]] }
  0x34   :  { %v1464_v5 = vadd.f32 %v163_v55, %v159_v53  ;;  %v1466_v6 = vadd.f32 %v163_v55, %v160_v54  ;;  %v194_v7 = vmul.f32 %v191_v51, %v1359_v36  ;;  %v1469_v8 = vadd.f32 %v182_v59, %v177_v56  ;;  %s1618_s25 = sld [smem:[#allocation2 + $0x25]] }
  0x35   :  { %v1471_v9 = vadd.f32 %v182_v59, %v178_v57  ;;  %v1473_v10 = vadd.f32 %v182_v59, %v179_v58  ;;  %v195_v11 = vmul.f32 %v191_v51, %v1361_v39  ;;  %v1476_v12 = vmin.f32 %v124_v21, %v120_v44  ;;  %s1620_s26 = sld [smem:[#allocation2 + $0x27]] }
  0x36   :  { %v1478_v13 = vadd.f32 %v163_v55, %v161_v60  ;;  %v1480_v14 = vadd.f32 %v182_v59, %v180_v61  ;;  %v196_v15 = vadd.f32 %v192_v63, %v189_v62  ;;  %v1484_v16 = vmax.f32 %v132_v30, %v120_v44  ;;  %s1627_s27 = sld [smem:[#allocation2 + $0x28]] }
  0x37   :  { %v197_v17 = vadd.f32 %v193_v3, %v189_v62  ;;  %v201_v18 = vstv %s1427_s6  ;;  %v239_v19 = vstv %s1433_s7  ;;  %v198_v20 = vadd.f32 %v194_v7, %v189_v62  ;;  %s1656_s28 = sld [smem:[#allocation2 + $0x26]] }
  0x38   :  { %v242_v22 = vstv %s1439_s8  ;;  %v258_v23 = vstv %s1447_s9  ;;  %v261_v24 = vstv %s1450_s10  ;;  %v199_v21 = vadd.f32 %v195_v11, %v189_v62  ;;  %s1666_s29 = sld [smem:[#allocation2 + $0x2a]] }
  0x39   :  { %v206_v25 = vmin.f32 %v1462_v4, %v1469_v8  ;;  %v207_v26 = vmin.f32 %v1464_v5, %v1471_v9  ;;  %v208_v27 = vmin.f32 %v1466_v6, %v1473_v10  ;;  %v202_v28 = vadd.f32 %v201_v18, %v196_v15  ;;  %s1674_s30 = sld [smem:[#allocation2 + $0x2b]] }
  0x3a   :  { %v209_v29 = vmin.f32 %v1478_v13, %v1480_v14  ;;  %v214_v30 = vmax.f32 %v1462_v4, %v1469_v8  ;;  %v240_v33 = vmul.f32 %v1353_v31, %v239_v19  ;;  %v243_v34 = vmul.f32 %v242_v22, %v1355_v32  ;;  %s1679_s4 = sld [smem:[#allocation2 + $0x29]] }
  0x3b   :  { %v244_v37 = vmul.f32 %v242_v22, %v1357_v35  ;;  %v259_v38 = vmul.f32 %v1353_v31, %v258_v23  ;;  %v262_v40 = vmul.f32 %v261_v24, %v1355_v32  ;;  %v203_v41 = vadd.f32 %v201_v18, %v197_v17  ;;  %s1698_s5 = sld [smem:[#allocation2 + $0x2c]] }
  0x3c   :  { %v204_v42 = vadd.f32 %v201_v18, %v198_v20  ;;  %v215_v43 = vmax.f32 %v1464_v5, %v1471_v9  ;;  %v245_v44 = vmul.f32 %v242_v22, %v1359_v36  ;;  %v205_v46 = vadd.f32 %v201_v18, %v199_v21  ;;  %s1701_s6 = sld [smem:[#allocation2 + $0x2d]] }
  0x3d   :  { %v216_v47 = vmax.f32 %v1466_v6, %v1473_v10  ;;  %v263_v50 = vmul.f32 %v261_v24, %v1357_v35  ;;  %v264_v51 = vmul.f32 %v261_v24, %v1359_v36  ;;  %v217_v52 = vmax.f32 %v1478_v13, %v1480_v14  ;;  %s1708_s7 = sld [smem:[#allocation2 + $0x2e]] }
  0x3e   :  { %v246_v53 = vmul.f32 %v242_v22, %v1361_v39  ;;  %v252_v54 = vstv %s1482_s11  ;;  %v265_v55 = vmul.f32 %v261_v24, %v1361_v39  ;;  %v1530_v56 = vmin.f32 %v206_v25, %v202_v28  ;;  %s1712_s8 = sld [smem:[#allocation2 + $0x30]] }
  0x3f   :  { %v247_v57 = vadd.f32 %v243_v34, %v240_v33  ;;  %v248_v58 = vadd.f32 %v244_v37, %v240_v33  ;;  %v266_v59 = vadd.f32 %v262_v40, %v259_v38  ;;  %v1534_v60 = vmin.f32 %v207_v26, %v203_v41  ;;  %s1715_s9 = sld [smem:[#allocation2 + $0x31]] }
  0x40   :  { %v1536_v61 = vmin.f32 %v208_v27, %v204_v42  ;;  %v249_v62 = vadd.f32 %v245_v44, %v240_v33  ;;  %v271_v63 = vstv %s1488_s12  ;;  %v267_v3 = vadd.f32 %v263_v50, %v259_v38  ;;  %s1752_s10 = sld [smem:[#allocation2 + $0x2f]] }
  0x41   :  { %v268_v4 = vadd.f32 %v264_v51, %v259_v38  ;;  %v277_v5 = vstv %s1493_s13  ;;  %v280_v6 = vstv %s1501_s14  ;;  %v1543_v7 = vmin.f32 %v209_v29, %v205_v46  ;;  %s1765_s11 = sld [smem:[#allocation2 + $0x32]] }
  0x42   :  { %v1545_v8 = vmax.f32 %v214_v30, %v202_v28  ;;  %v250_v9 = vadd.f32 %v246_v53, %v240_v33  ;;  %v269_v10 = vadd.f32 %v265_v55, %v259_v38  ;;  %v1547_v11 = vmax.f32 %v215_v43, %v203_v41  ;;  %s1769_s12 = sld [smem:[#allocation2 + $0x33]] }
  0x43   :  { %v1549_v13 = vadd.f32 %v252_v54, %v247_v57  ;;  %v1551_v14 = vadd.f32 %v252_v54, %v248_v58  ;;  %v1553_v15 = vadd.f32 %v271_v63, %v266_v59  ;;  %v1555_v17 = vadd.f32 %v252_v54, %v249_v62  ;;  %s1776_s13 = sld [smem:[#allocation2 + $0x34]] }
  0x44   :  { %v278_v18 = vmul.f32 %v1353_v31, %v277_v5  ;;  %v281_v19 = vmul.f32 %v280_v6, %v1355_v32  ;;  %v282_v20 = vmul.f32 %v280_v6, %v1357_v35  ;;  %v1560_v22 = vadd.f32 %v271_v63, %v267_v3  ;;  %s1787_s14 = sld [smem:[#allocation2 + $0x35]] }
  0x45   :  { %v1562_v23 = vadd.f32 %v271_v63, %v268_v4  ;;  %v283_v24 = vmul.f32 %v280_v6, %v1359_v36  ;;  %v284_v21 = vmul.f32 %v280_v6, %v1361_v39  ;;  %v1566_v25 = vmax.f32 %v216_v47, %v204_v42 }
  0x46   :  { %v1568_v26 = vmax.f32 %v217_v52, %v205_v46  ;;  %v1570_v27 = vadd.f32 %v252_v54, %v250_v9  ;;  %v1572_v28 = vadd.f32 %v271_v63, %v269_v10  ;;  %v290_v29 = vstv %s1515_s15  ;;  %s1791_s15 = sld [smem:[#allocation2 + $0x36]] }
  0x47   :  { %v295_v30 = vmin.f32 %v1549_v13, %v1553_v15  ;;  %v328_v33 = vstv %s1521_s16  ;;  %v331_v34 = vstv %s1528_s0  ;;  %v285_v37 = vadd.f32 %v281_v19, %v278_v18  ;;  %s1798_s16 = sld [smem:[#allocation2 + $0x37]] }
  0x48   :  { %v286_v38 = vadd.f32 %v282_v20, %v278_v18  ;;  %v347_v40 = vstv %s1532_s17  ;;  %v350_v41 = vstv %s1539_s18  ;;  %v287_v42 = vadd.f32 %v283_v24, %v278_v18  ;;  %s1802_s0 = sld [smem:[#allocation2 + $0x39]] }
  0x49   :  { %v288_v43 = vadd.f32 %v284_v21, %v278_v18  ;;  %v296_v44 = vmin.f32 %v1551_v14, %v1560_v22  ;;  %v297_v46 = vmin.f32 %v1555_v17, %v1562_v23  ;;  %v298_v47 = vmin.f32 %v1570_v27, %v1572_v28  ;;  %s1805_s17 = sld [smem:[#allocation2 + $0x3a]] }
  0x4a   :  { %v303_v50 = vmax.f32 %v1549_v13, %v1553_v15  ;;  %v329_v51 = vmul.f32 %v1353_v31, %v328_v33  ;;  %v332_v52 = vmul.f32 %v331_v34, %v1355_v32  ;;  %v333_v53 = vmul.f32 %v331_v34, %v1357_v35  ;;  %s1836_s18 = sld [smem:[#allocation2 + $0x38]] }
  0x4b   :  { %v348_v54 = vmul.f32 %v1353_v31, %v347_v40  ;;  %v351_v55 = vmul.f32 %v350_v41, %v1355_v32  ;;  %v352_v57 = vmul.f32 %v350_v41, %v1357_v35  ;;  %v291_v58 = vadd.f32 %v290_v29, %v285_v37 }
  0x4c   :  { %v292_v59 = vadd.f32 %v290_v29, %v286_v38  ;;  %v304_v62 = vmax.f32 %v1551_v14, %v1560_v22  ;;  %v334_v63 = vmul.f32 %v331_v34, %v1359_v36  ;;  %v293_v3 = vadd.f32 %v290_v29, %v287_v42 }
  0x4d   :  { %v294_v4 = vadd.f32 %v290_v29, %v288_v43  ;;  %v305_v5 = vmax.f32 %v1555_v17, %v1562_v23  ;;  %v353_v6 = vmul.f32 %v350_v41, %v1359_v36  ;;  %v306_v9 = vmax.f32 %v1570_v27, %v1572_v28 }
  0x4e   :  { %v335_v10 = vmul.f32 %v331_v34, %v1361_v39  ;;  %v341_v13 = vstv %s1574_s19  ;;  %v354_v14 = vmul.f32 %v350_v41, %v1361_v39  ;;  %v336_v15 = vadd.f32 %v332_v52, %v329_v51  ;;  %s1846_s19 = sld [smem:[#allocation2 + $0x3b]] }
  0x4f   :  { %v337_v18 = vadd.f32 %v333_v53, %v329_v51  ;;  %v355_v17 = vadd.f32 %v351_v55, %v348_v54  ;;  %v356_v19 = vadd.f32 %v352_v57, %v348_v54  ;;  %v1622_v20 = vmin.f32 %v295_v30, %v291_v58 }
  0x50   :  { %v1624_v22 = vmin.f32 %v296_v44, %v292_v59  ;;  %v338_v23 = vadd.f32 %v334_v63, %v329_v51  ;;  %v360_v24 = vstv %s1581_s20  ;;  %v1629_v21 = vmin.f32 %v297_v46, %v293_v3  ;;  %s1853_s20 = sld [smem:[#allocation2 + $0x3c]] }
  0x51   :  { %v357_v27 = vadd.f32 %v353_v6, %v348_v54  ;;  %v366_v28 = vstv %s1585_s21  ;;  %v369_v29 = vstv %s1591_s22  ;;  %v1633_v33 = vmin.f32 %v298_v47, %v294_v4  ;;  %s1861_s21 = sld [smem:[#allocation2 + $0x3d]] }
  0x52   :  { %v1635_v34 = vmax.f32 %v303_v50, %v291_v58  ;;  %v339_v37 = vadd.f32 %v335_v10, %v329_v51  ;;  %v358_v38 = vadd.f32 %v354_v14, %v348_v54  ;;  %v1637_v40 = vadd.f32 %v341_v13, %v336_v15  ;;  %s1879_s22 = sld [smem:[#allocation2 + $0x3e]] }
  0x53   :  { %3252 = vst [vmem:[#allocation8_spill] sm:$0xff] %v1633_v33  ;;  %v1639_v30 = vadd.f32 %v341_v13, %v337_v18  ;;  %v1641_v41 = vadd.f32 %v360_v24, %v355_v17  ;;  %v1643_v42 = vadd.f32 %v360_v24, %v356_v19  ;;  %v1645_v43 = vmax.f32 %v304_v62, %v292_v59 }
  0x54   :  { %v1647_v44 = vadd.f32 %v341_v13, %v338_v23  ;;  %v367_v46 = vmul.f32 %v1353_v31, %v366_v28  ;;  %v370_v47 = vmul.f32 %v369_v29, %v1355_v32  ;;  %v1651_v50 = vadd.f32 %v360_v24, %v357_v27 }
  0x55   :  { %v371_v51 = vmul.f32 %v369_v29, %v1357_v35  ;;  %v372_v52 = vmul.f32 %v369_v29, %v1359_v36  ;;  %v373_v53 = vmul.f32 %v369_v29, %v1361_v39  ;;  %v1658_v54 = vmax.f32 %v305_v5, %v293_v3 }
  0x56   :  { %v1660_v55 = vmax.f32 %v306_v9, %v294_v4  ;;  %v1662_v57 = vadd.f32 %v341_v13, %v339_v37  ;;  %v1664_v58 = vadd.f32 %v360_v24, %v358_v38  ;;  %v379_v59 = vstv %s1606_s23  ;;  %s1884_s23 = sld [smem:[#allocation2 + $0x3f]] }
  0x57   :  { %3253 = vst [vmem:[#allocation9_spill] sm:$0xff] %v1658_v54  ;;  %v384_v62 = vmin.f32 %v1637_v40, %v1641_v41  ;;  %v385_v63 = vmin.f32 %v1639_v30, %v1643_v42  ;;  %v417_v6 = vstv %s1611_s24  ;;  %v374_v3 = vadd.f32 %v370_v47, %v367_v46  ;;  %s1888_s24 = sld [smem:[#allocation2 + $0x40]] }
  0x58   :  { %3254 = vst [vmem:[#allocation10_spill] sm:$0xff] %v1660_v55  ;;  %v420_v5 = vstv %s1618_s25  ;;  %v436_v4 = vstv %s1620_s26  ;;  %v439_v9 = vstv %s1627_s27  ;;  %v375_v10 = vadd.f32 %v371_v51, %v367_v46  ;;  %s1891_s25 = sld [smem:[#allocation2 + $0x42]] }
  0x59   :  { %v376_v13 = vadd.f32 %v372_v52, %v367_v46  ;;  %v377_v14 = vadd.f32 %v373_v53, %v367_v46  ;;  %v386_v15 = vmin.f32 %v1647_v44, %v1651_v50  ;;  %v387_v18 = vmin.f32 %v1662_v57, %v1664_v58  ;;  %s1901_s26 = sld [smem:[#allocation2 + $0x43]] }
  0x5a   :  { %v392_v17 = vmax.f32 %v1637_v40, %v1641_v41  ;;  %v393_v19 = vmax.f32 %v1639_v30, %v1643_v42  ;;  %v394_v23 = vmax.f32 %v1647_v44, %v1651_v50  ;;  %v418_v24 = vmul.f32 %v1353_v31, %v417_v6  ;;  %s1932_s27 = sld [smem:[#allocation2 + $0x41]] }
  0x5b   :  { %v421_v27 = vmul.f32 %v420_v5, %v1355_v32  ;;  %v437_v28 = vmul.f32 %v1353_v31, %v436_v4  ;;  %v440_v29 = vmul.f32 %v439_v9, %v1355_v32  ;;  %v380_v37 = vadd.f32 %v379_v59, %v374_v3 }
  0x5c   :  { %v422_v38 = vmul.f32 %v420_v5, %v1357_v35  ;;  %v423_v40 = vmul.f32 %v420_v5, %v1359_v36  ;;  %v441_v30 = vmul.f32 %v439_v9, %v1357_v35  ;;  %v381_v41 = vadd.f32 %v379_v59, %v375_v10 }
  0x5d   :  { %v382_v42 = vadd.f32 %v379_v59, %v376_v13  ;;  %v383_v44 = vadd.f32 %v379_v59, %v377_v14  ;;  %v442_v46 = vmul.f32 %v439_v9, %v1359_v36  ;;  %v395_v47 = vmax.f32 %v1662_v57, %v1664_v58 }
  0x5e   :  { %v424_v50 = vmul.f32 %v420_v5, %v1361_v39  ;;  %v430_v51 = vstv %s1656_s28  ;;  %v443_v52 = vmul.f32 %v439_v9, %v1361_v39  ;;  %v425_v53 = vadd.f32 %v421_v27, %v418_v24  ;;  %s1944_s28 = sld [smem:[#allocation2 + $0x45]] }
  0x5f   :  { %v444_v6 = vadd.f32 %v440_v29, %v437_v28  ;;  %v455_v3 = vstv %s1666_s29  ;;  %v458_v4 = vstv %s1674_s30  ;;  %v426_v59 = vadd.f32 %v422_v38, %v418_v24  ;;  %s1952_s29 = sld [smem:[#allocation2 + $0x46]] }
  0x60   :  { %v427_v10 = vadd.f32 %v423_v40, %v418_v24  ;;  %v445_v13 = vadd.f32 %v441_v30, %v437_v28  ;;  %v449_v14 = vstv %s1679_s4  ;;  %v1717_v57 = vmin.f32 %v384_v62, %v380_v37  ;;  %s1965_s30 = sld [smem:[#allocation2 + $0x44]] }
  0x61   :  { %v1719_v58 = vmin.f32 %v385_v63, %v381_v41  ;;  %v1721_v5 = vmin.f32 %v386_v15, %v382_v42  ;;  %v446_v9 = vadd.f32 %v442_v46, %v437_v28  ;;  %v428_v55 = vadd.f32 %v424_v50, %v418_v24  ;;  %s2000_s4 = sld [smem:[#allocation2 + $0x47]] }
  0x62   :  { %v447_v27 = vadd.f32 %v443_v52, %v437_v28  ;;  %v456_v29 = vmul.f32 %v1353_v31, %v455_v3  ;;  %v459_v33 = vmul.f32 %v458_v4, %v1355_v32  ;;  %v1725_v54 = vmin.f32 %v387_v18, %v383_v44 }
  0x63   :  { %3255 = vst [vmem:[#allocation11_spill] sm:$0xff] %v1719_v58  ;;  %3256 = vst [vmem:[#allocation12_spill] sm:$0xff] %v1721_v5  ;;  %v1727_v38 = vmax.f32 %v392_v17, %v380_v37  ;;  %v1729_v40 = vadd.f32 %v430_v51, %v425_v53  ;;  %v1731_v62 = vadd.f32 %v449_v14, %v444_v6  ;;  %v468_v53 = vstv %s1698_s5  ;;  %s2014_s5 = sld [smem:[#allocation2 + $0x48]] }
  0x64   :  { %3257 = vst [vmem:[#allocation13_spill] sm:$0xff] %v1725_v54  ;;  %v1733_v63 = vmax.f32 %v393_v19, %v381_v41  ;;  %v1735_v15 = vadd.f32 %v430_v51, %v426_v59  ;;  %v1737_v24 = vadd.f32 %v430_v51, %v427_v10  ;;  %v1739_v28 = vadd.f32 %v449_v14, %v445_v13 }
  0x65   :  { %v1741_v18 = vadd.f32 %v449_v14, %v446_v9  ;;  %v460_v17 = vmul.f32 %v458_v4, %v1357_v35  ;;  %v461_v37 = vmul.f32 %v458_v4, %v1359_v36  ;;  %v462_v30 = vmul.f32 %v458_v4, %v1361_v39 }
  0x66   :  { %3258 = vst [vmem:[#allocation14_spill] sm:$0xff] %v1733_v63  ;;  %v1746_v19 = vmax.f32 %v394_v23, %v382_v42  ;;  %v1748_v41 = vadd.f32 %v430_v51, %v428_v55  ;;  %v1750_v46 = vadd.f32 %v449_v14, %v447_v27  ;;  %v463_v50 = vadd.f32 %v459_v33, %v456_v29 }
  0x67   :  { %v1754_v52 = vmax.f32 %v395_v47, %v383_v44  ;;  %v473_v6 = vmin.f32 %v1729_v40, %v1731_v62  ;;  %v506_v3 = vstv %s1701_s6  ;;  %v474_v59 = vmin.f32 %v1735_v15, %v1739_v28  ;;  %s2029_s6 = sld [smem:[#allocation2 + $0x49]] }
  0x68   :  { %3259 = vst [vmem:[#allocation15_spill] sm:$0xff] %v1746_v19  ;;  %v509_v4 = vstv %s1708_s7  ;;  %v525_v23 = vstv %s1712_s8  ;;  %v528_v42 = vstv %s1715_s9  ;;  %v464_v55 = vadd.f32 %v460_v17, %v456_v29  ;;  %s2057_s7 = sld [smem:[#allocation2 + $0x4b]] }
  0x69   :  { %3260 = vst [vmem:[#allocation16_spill] sm:$0xff] %v1754_v52  ;;  %v465_v51 = vadd.f32 %v461_v37, %v456_v29  ;;  %v466_v33 = vadd.f32 %v462_v30, %v456_v29  ;;  %v475_v44 = vmin.f32 %v1737_v24, %v1741_v18  ;;  %v469_v47 = vadd.f32 %v468_v53, %v463_v50  ;;  %s2078_s8 = sld [smem:[#allocation2 + $0x4c]] }
  0x6a   :  { %v476_v10 = vmin.f32 %v1748_v41, %v1750_v46  ;;  %v481_v13 = vmax.f32 %v1729_v40, %v1731_v62  ;;  %v507_v14 = vmul.f32 %v1353_v31, %v506_v3  ;;  %v510_v9 = vmul.f32 %v509_v4, %v1355_v32  ;;  %s2110_s9 = sld [smem:[#allocation2 + $0x4a]] }
  0x6b   :  { %v511_v27 = vmul.f32 %v509_v4, %v1357_v35  ;;  %v526_v29 = vmul.f32 %v1353_v31, %v525_v23  ;;  %v529_v17 = vmul.f32 %v528_v42, %v1355_v32  ;;  %v482_v37 = vmax.f32 %v1735_v15, %v1739_v28 }
  0x6c   :  { %v512_v30 = vmul.f32 %v509_v4, %v1359_v36  ;;  %v530_v40 = vmul.f32 %v528_v42, %v1357_v35  ;;  %v531_v62 = vmul.f32 %v528_v42, %v1359_v36  ;;  %v470_v50 = vadd.f32 %v468_v53, %v464_v55 }
  0x6d   :  { %v471_v3 = vadd.f32 %v468_v53, %v465_v51  ;;  %v472_v52 = vadd.f32 %v468_v53, %v466_v33  ;;  %v483_v23 = vmax.f32 %v1737_v24, %v1741_v18  ;;  %v484_v15 = vmax.f32 %v1748_v41, %v1750_v46 }
  0x6e   :  { %v513_v28 = vmul.f32 %v509_v4, %v1361_v39  ;;  %v519_v54 = vstv %s1752_s10  ;;  %v532_v19 = vmul.f32 %v528_v42, %v1361_v39  ;;  %v1800_v55 = vmin.f32 %v473_v6, %v469_v47  ;;  %s2127_s10 = sld [smem:[#allocation2 + $0x4d]] }
  0x6f   :  { %v514_v53 = vadd.f32 %v510_v9, %v507_v14  ;;  %v515_v51 = vadd.f32 %v511_v27, %v507_v14  ;;  %v533_v33 = vadd.f32 %v529_v17, %v526_v29  ;;  %v516_v24 = vadd.f32 %v512_v30, %v507_v14 }
  0x70   :  { %3261 = vst [vmem:[#allocation17_spill] sm:$0xff] %v1800_v55  ;;  %v534_v18 = vadd.f32 %v530_v40, %v526_v29  ;;  %v535_v5 = vadd.f32 %v531_v62, %v526_v29  ;;  %v538_v41 = vstv %s1765_s11  ;;  %v1807_v46 = vmin.f32 %v474_v59, %v470_v50  ;;  %s2144_s11 = sld [smem:[#allocation2 + $0x4e]] }
  0x71   :  { %v1809_v4 = vmin.f32 %v475_v44, %v471_v3  ;;  %v1811_v42 = vmin.f32 %v476_v10, %v472_v52  ;;  %v544_v6 = vstv %s1769_s12  ;;  %v1814_v55 = vmax.f32 %v481_v13, %v469_v47  ;;  %s2157_s12 = sld [smem:[#allocation2 + $0x4f]] }
  0x72   :  { %3262 = vst [vmem:[#allocation18_spill] sm:$0xff] %v1807_v46  ;;  %v517_v9 = vadd.f32 %v513_v28, %v507_v14  ;;  %v536_v27 = vadd.f32 %v532_v19, %v526_v29  ;;  %v547_v17 = vstv %s1776_s13  ;;  %v1817_v63 = vmax.f32 %v482_v37, %v470_v50  ;;  %s2245_s13 = sld [smem:[#allocation2 + $0x50]] }
  0x73   :  { %3263 = vst [vmem:[#allocation19_spill] sm:$0xff] %v1809_v4  ;;  %3264 = vst [vmem:[#allocation20_spill] sm:$0xff] %v1811_v42  ;;  %v1819_v30 = vadd.f32 %v519_v54, %v514_v53  ;;  %v1821_v40 = vadd.f32 %v519_v54, %v515_v51  ;;  %v1823_v62 = vadd.f32 %v538_v41, %v533_v33  ;;  %v557_v53 = vstv %s1787_s14  ;;  %s2263_s14 = sld [smem:[#allocation2 + $0x51]] }
  0x74   :  { %3265 = vst [vmem:[#allocation21_spill] sm:$0xff] %v1814_v55  ;;  %3266 = vst [vmem:[#allocation22_spill] sm:$0xff] %v1817_v63  ;;  %v1825_v59 = vadd.f32 %v519_v54, %v516_v24  ;;  %v1827_v44 = vadd.f32 %v538_v41, %v534_v18  ;;  %v1829_v47 = vadd.f32 %v538_v41, %v535_v5  ;;  %v595_v33 = vstv %s1791_s15  ;;  %s2292_s15 = sld [smem:[#allocation2 + $0x52]] }
  0x75   :  { %v545_v19 = vmul.f32 %v1353_v31, %v544_v6  ;;  %v548_v10 = vmul.f32 %v547_v17, %v1355_v32  ;;  %v549_v13 = vmul.f32 %v547_v17, %v1357_v35  ;;  %v550_v14 = vmul.f32 %v547_v17, %v1359_v36 }
  0x76   :  { %v551_v29 = vmul.f32 %v547_v17, %v1361_v39  ;;  %v1838_v37 = vmax.f32 %v483_v23, %v471_v3  ;;  %v1840_v50 = vmax.f32 %v484_v15, %v472_v52  ;;  %v1842_v5 = vadd.f32 %v519_v54, %v517_v9 }
  0x77   :  { %v1844_v28 = vadd.f32 %v538_v41, %v536_v27  ;;  %v562_v51 = vmin.f32 %v1819_v30, %v1823_v62  ;;  %v598_v24 = vstv %s1798_s16  ;;  %v563_v3 = vmin.f32 %v1821_v40, %v1827_v44  ;;  %s2315_s16 = sld [smem:[#allocation2 + $0x53]] }
  0x78   :  { %3267 = vst [vmem:[#allocation23_spill] sm:$0xff] %v1838_v37  ;;  %3268 = vst [vmem:[#allocation24_spill] sm:$0xff] %v1840_v50  ;;  %v564_v52 = vmin.f32 %v1825_v59, %v1829_v47  ;;  %v614_v54 = vstv %s1802_s0  ;;  %v617_v23 = vstv %s1805_s17  ;;  %v552_v15 = vadd.f32 %v548_v10, %v545_v19  ;;  %s2331_s0 = sld [smem:[#allocation2 + $0x54]] }
  0x79   :  { %v553_v18 = vadd.f32 %v549_v13, %v545_v19  ;;  %v554_v41 = vadd.f32 %v550_v14, %v545_v19  ;;  %v555_v6 = vadd.f32 %v551_v29, %v545_v19  ;;  %v565_v9 = vmin.f32 %v1842_v5, %v1844_v28  ;;  %s2349_s17 = sld [smem:[#allocation2 + $0x55]] }
  0x7a   :  { %v570_v27 = vmax.f32 %v1819_v30, %v1823_v62  ;;  %v596_v17 = vmul.f32 %v1353_v31, %v595_v33  ;;  %v599_v50 = vmul.f32 %v598_v24, %v1355_v32  ;;  %v571_v42 = vmax.f32 %v1821_v40, %v1827_v44 }
  0x7b   :  { %v600_v37 = vmul.f32 %v598_v24, %v1357_v35  ;;  %v615_v10 = vmul.f32 %v1353_v31, %v614_v54  ;;  %v618_v19 = vmul.f32 %v617_v23, %v1355_v32  ;;  %v572_v13 = vmax.f32 %v1825_v59, %v1829_v47 }
  0x7c   :  { %v601_v30 = vmul.f32 %v598_v24, %v1359_v36  ;;  %v619_v62 = vmul.f32 %v617_v23, %v1357_v35  ;;  %v620_v14 = vmul.f32 %v617_v23, %v1359_v36  ;;  %v558_v29 = vadd.f32 %v557_v53, %v552_v15 }
  0x7d   :  { %v559_v33 = vadd.f32 %v557_v53, %v553_v18  ;;  %v560_v40 = vadd.f32 %v557_v53, %v554_v41  ;;  %v561_v44 = vadd.f32 %v557_v53, %v555_v6  ;;  %v602_v54 = vmul.f32 %v598_v24, %v1361_v39 }
  0x7e   :  { %v603_v4 = vadd.f32 %v599_v50, %v596_v17  ;;  %v608_v63 = vstv %s1836_s18  ;;  %v621_v59 = vmul.f32 %v617_v23, %v1361_v39  ;;  %v604_v47 = vadd.f32 %v600_v37, %v596_v17  ;;  %s2367_s18 = sld [smem:[#allocation2 + $0x57]] }
  0x7f   :  { %v622_v46 = vadd.f32 %v618_v19, %v615_v10  ;;  %v627_v55 = vstv %s1846_s19  ;;  %v633_v58 = vstv %s1853_s20  ;;  %v605_v15 = vadd.f32 %v601_v30, %v596_v17  ;;  %s2415_s19 = sld [smem:[#allocation2 + $0x56]] }
  0x80   :  { %v623_v18 = vadd.f32 %v619_v62, %v615_v10  ;;  %v624_v41 = vadd.f32 %v620_v14, %v615_v10  ;;  %v636_v53 = vstv %s1861_s21  ;;  %v1893_v6 = vmin.f32 %v562_v51, %v558_v29  ;;  %s2447_s20 = sld [smem:[#allocation2 + $0x58]] }
  0x81   :  { %v1895_v50 = vmin.f32 %v563_v3, %v559_v33  ;;  %v1897_v24 = vmin.f32 %v564_v52, %v560_v40  ;;  %v573_v37 = vmax.f32 %v1842_v5, %v1844_v28  ;;  %v1903_v23 = vmin.f32 %v565_v9, %v561_v44  ;;  %s2489_s21 = sld [smem:[#allocation2 + $0x59]] }
  0x82   :  { %v606_v19 = vadd.f32 %v602_v54, %v596_v17  ;;  %v1905_v30 = vadd.f32 %v608_v63, %v603_v4  ;;  %v625_v62 = vadd.f32 %v621_v59, %v615_v10  ;;  %vm137_vm0 = vcmp.ge.f32.partialorder %v1435_v45, 0.0 }
  0x83   :  { %3269 = vst [vmem:[#allocation25_spill] sm:$0xff] %v1897_v24  ;;  %3270 = vst [vmem:[#allocation26_spill] sm:$0xff] %v1903_v23  ;;  %vm141_vm1 = vcmp.le.f32.partialorder %v1443_v49, 0.0  ;;  %v1909_v51 = vadd.f32 %v608_v63, %v604_v47  ;;  %v1911_v3 = vadd.f32 %v627_v55, %v622_v46  ;;  %v634_v52 = vmul.f32 %v1353_v31, %v633_v58 }
  0x84   :  { %v637_v5 = vmul.f32 %v636_v53, %v1355_v32  ;;  %vm138_vm2 = vcmp.ge.f32.partialorder %v1441_v48, 0.0  ;;  %vm142_vm3 = vcmp.le.f32.partialorder %v1457_v1, 0.0  ;;  %v1917_v28 = vadd.f32 %v608_v63, %v605_v15  ;;  %vm1993_vm14 = vmor %vm137_vm0, %vm141_vm1 }
  0x85   :  { %v1919_v4 = vadd.f32 %v627_v55, %v623_v18  ;;  %v1921_v9 = vadd.f32 %v627_v55, %v624_v41  ;;  %v638_v17 = vmul.f32 %v636_v53, %v1357_v35  ;;  %vm139_vm4 = vcmp.ge.f32.partialorder %v1455_v0, 0.0  ;;  %vm2006_vm15 = vmor %vm138_vm2, %vm142_vm3 }
  0x86   :  { %vm143_vm5 = vcmp.le.f32.partialorder %v1459_v2, 0.0  ;;  %v1926_v58 = vmax.f32 %v570_v27, %v558_v29  ;;  %v1928_v46 = vmax.f32 %v571_v42, %v559_v33  ;;  %v639_v10 = vmul.f32 %v636_v53, %v1359_v36  ;;  %v3282_v2 = vld [vmem:[#allocation9_spill] sm:$0xff] }
  0x87   :  { %v640_v14 = vmul.f32 %v636_v53, %v1361_v39  ;;  %vm140_vm6 = vcmp.ge.f32.partialorder %v1476_v12, 0.0  ;;  %vm144_vm7 = vcmp.le.f32.partialorder %v1484_v16, 0.0  ;;  %v1936_v54 = vmax.f32 %v572_v13, %v560_v40  ;;  %vm2020_vm12 = vmor %vm139_vm4, %vm143_vm5  ;;  %v3285_v12 = vld [vmem:[#allocation8_spill] sm:$0xff]  ;;  %v3330_v16 = vld [vmem:[#allocation17_spill] sm:$0xff] }
  0x88   :  { %3271 = vst [vmem:[#allocation27_spill] sm:$0xff] %v1928_v46  ;;  %v1938_v59 = vmax.f32 %v573_v37, %v561_v44  ;;  %v1940_v27 = vadd.f32 %v608_v63, %v606_v19  ;;  %v1942_v42 = vadd.f32 %v627_v55, %v625_v62  ;;  %vm222_vm8 = vcmp.ge.f32.partialorder %v1530_v56, 0.0  ;;  %vm2035_vm4 = vmor %vm140_vm6, %vm144_vm7  ;;  %v3335_v56 = vld [vmem:[#allocation18_spill] sm:$0xff] }
  0x89   :  { %3272 = vst [vmem:[#allocation28_spill] sm:$0xff] %v1936_v54  ;;  %vm226_vm9 = vcmp.le.f32.partialorder %v1545_v8, 0.0  ;;  %v641_v29 = vadd.f32 %v637_v5, %v634_v52  ;;  %v646_v33 = vstv %s1879_s22  ;;  %v651_v13 = vmin.f32 %v1905_v30, %v1911_v3  ;;  %s2519_s22 = sld [smem:[#allocation2 + $0x5a]] }
  0x8a   :  { %3273 = vst [vmem:[#allocation29_spill] sm:$0xff] %v1938_v59  ;;  %v684_v40 = vstv %s1884_s23  ;;  %vm223_vm10 = vcmp.ge.f32.partialorder %v1534_v60, 0.0  ;;  %vm227_vm11 = vcmp.le.f32.partialorder %v1547_v11, 0.0  ;;  %v642_v63 = vadd.f32 %v638_v17, %v634_v52  ;;  %vm2046_vm3 = vmor %vm222_vm8, %vm226_vm9  ;;  %v3340_v60 = vld [vmem:[#allocation19_spill] sm:$0xff]  ;;  %s2586_s23 = sld [smem:[#allocation2 + $0x5b]] }
  0x8b   :  { %v652_v55 = vmin.f32 %v1909_v51, %v1919_v4  ;;  %v687_v47 = vstv %s1888_s24  ;;  %vm228_vm13 = vcmp.le.f32.partialorder %v1566_v25, 0.0  ;;  %v643_v15 = vadd.f32 %v639_v10, %v634_v52  ;;  %vm2063_vm8 = vmor %vm223_vm10, %vm227_vm11  ;;  %v3346_v25 = vld [vmem:[#allocation20_spill] sm:$0xff]  ;;  %s2600_s24 = sld [smem:[#allocation2 + $0x5c]] }
  0x8c   :  { %v644_v18 = vadd.f32 %v640_v14, %v634_v52  ;;  %v703_v41 = vstv %s1891_s25  ;;  %v706_v53 = vstv %s1901_s26  ;;  %v654_v37 = vmin.f32 %v1940_v27, %v1942_v42  ;;  %s2625_s25 = sld [smem:[#allocation2 + $0x5d]] }
  0x8d   :  { %v1977_v5 = vadd.f32 %v646_v33, %v641_v29  ;;  %v685_v17 = vmul.f32 %v1353_v31, %v684_v40  ;;  %v688_v10 = vmul.f32 %v687_v47, %v1355_v32  ;;  %v689_v14 = vmul.f32 %v687_v47, %v1357_v35  ;;  %s2631_s26 = sld [smem:[#allocation2 + $0x5e]] }
  0x8e   :  { %v690_v44 = vmul.f32 %v687_v47, %v1359_v36  ;;  %v704_v59 = vmul.f32 %v1353_v31, %v703_v41  ;;  %v707_v19 = vmul.f32 %v706_v53, %v1355_v32  ;;  %v708_v62 = vmul.f32 %v706_v53, %v1357_v35 }
  0x8f   :  { %v648_v23 = vadd.f32 %v646_v33, %v642_v63  ;;  %v691_v29 = vmul.f32 %v687_v47, %v1361_v39  ;;  %v709_v52 = vmul.f32 %v706_v53, %v1359_v36  ;;  %v710_v40 = vmul.f32 %v706_v53, %v1361_v39 }
  0x90   :  { %v649_v41 = vadd.f32 %v646_v33, %v643_v15  ;;  %v650_v24 = vadd.f32 %v646_v33, %v644_v18  ;;  %v662_v63 = vmax.f32 %v1940_v27, %v1942_v42  ;;  %v697_v46 = vstv %s1932_s27  ;;  %s2646_s27 = sld [smem:[#allocation2 + $0x60]] }
  0x91   :  { %vm311_vm0 = vcmp.ge.f32.partialorder %v1622_v20, 0.0  ;;  %vm315_vm1 = vcmp.le.f32.partialorder %v1635_v34, 0.0  ;;  %v692_v45 = vadd.f32 %v688_v10, %v685_v17  ;;  %v693_v33 = vadd.f32 %v689_v14, %v685_v17  ;;  %v3336_v20 = vld [vmem:[#allocation22_spill] sm:$0xff]  ;;  %v3341_v34 = vld [vmem:[#allocation23_spill] sm:$0xff] }
  0x92   :  { %v722_v47 = vstv %s1944_s28  ;;  %v725_v15 = vstv %s1952_s29  ;;  %v2027_v1 = vmin.f32 %v651_v13, %v1977_v5  ;;  %v694_v27 = vadd.f32 %v690_v44, %v685_v17  ;;  %s2702_s28 = sld [smem:[#allocation2 + $0x5f]] }
  0x93   :  { %v711_v42 = vadd.f32 %v707_v19, %v704_v59  ;;  %v712_v18 = vadd.f32 %v708_v62, %v704_v59  ;;  %vm313_vm5 = vcmp.ge.f32.partialorder %v1629_v21, 0.0  ;;  %vm317_vm2 = vcmp.le.f32.partialorder %v3282_v2, 0.0  ;;  %v3286_v19 = vld [vmem:[#allocation10_spill] sm:$0xff]  ;;  %v3347_v2 = vld [vmem:[#allocation24_spill] sm:$0xff]  ;;  %s2722_s29 = sld [smem:[#allocation2 + $0x61]] }
  0x94   :  { %v695_v53 = vadd.f32 %v691_v29, %v685_v17  ;;  %v713_v13 = vadd.f32 %v709_v52, %v704_v59  ;;  %v714_v10 = vadd.f32 %v710_v40, %v704_v59  ;;  %v716_v44 = vstv %s1965_s30  ;;  %s2739_s30 = sld [smem:[#allocation2 + $0x62]] }
  0x95   :  { %v2052_v62 = vmin.f32 %v652_v55, %v648_v23  ;;  %v723_v14 = vmul.f32 %v1353_v31, %v722_v47  ;;  %v726_v52 = vmul.f32 %v725_v15, %v1355_v32  ;;  %v727_v59 = vmul.f32 %v725_v15, %v1357_v35 }
  0x96   :  { %v3289_v8 = vmin.f32 %v1917_v28, %v1921_v9  ;;  %v2072_v17 = vmin.f32 %v654_v37, %v650_v24  ;;  %v2074_v29 = vadd.f32 %v697_v46, %v692_v45  ;;  %v2076_v40 = vadd.f32 %v697_v46, %v693_v33 }
  0x97   :  { %vm3292_vm9 = vcmp.ge.f32.partialorder %v1536_v61, 0.0  ;;  %v2088_v11 = vadd.f32 %v697_v46, %v694_v27  ;;  %v2090_v47 = vadd.f32 %v716_v44, %v711_v42  ;;  %v2092_v37 = vadd.f32 %v716_v44, %v712_v18 }
  0x98   :  { %v2070_v55 = vmin.f32 %v3289_v8, %v649_v41  ;;  %3291 = vst [vmem:[#allocation8_spill] sm:$0xff] %v2072_v17  ;;  %vm2084_vm10 = vmor %vm3292_vm9, %vm228_vm13  ;;  %v728_v45 = vmul.f32 %v725_v15, %v1359_v36  ;;  %vm3295_vm11 = vcmp.le.f32.partialorder %v1568_v26, 0.0  ;;  %vm3296_vm6 = vcmp.ge.f32.partialorder %v1543_v7, 0.0 }
  0x99   :  { %vm2099_vm7 = vmor %vm3296_vm6, %vm3295_vm11  ;;  %v2103_v61 = vadd.f32 %v697_v46, %v695_v53  ;;  %v2105_v33 = vadd.f32 %v716_v44, %v713_v13  ;;  %v2107_v27 = vadd.f32 %v716_v44, %v714_v10  ;;  %v729_v42 = vmul.f32 %v725_v15, %v1361_v39  ;;  %v3306_v13 = vld [vmem:[#allocation14_spill] sm:$0xff] }
  0x9a   :  { %3290 = vst [vmem:[#allocation9_spill] sm:$0xff] %v2070_v55  ;;  %v3299_v7 = vmax.f32 %v1905_v30, %v1911_v3  ;;  %v3300_v46 = vmax.f32 %v1909_v51, %v1919_v4  ;;  %v730_v53 = vadd.f32 %v726_v52, %v723_v14  ;;  %v731_v15 = vadd.f32 %v727_v59, %v723_v14  ;;  %vm2175_vm11 = vmor %vm311_vm0, %vm315_vm1 }
  0x9b   :  { %v3302_v30 = vmax.f32 %v1917_v28, %v1921_v9  ;;  %v735_v3 = vstv %s2000_s4  ;;  %v773_v4 = vstv %s2014_s5  ;;  %v732_v10 = vadd.f32 %v728_v45, %v723_v14  ;;  %vm2205_vm6 = vmor %vm313_vm5, %vm317_vm2  ;;  %s2846_s4 = sld [smem:[#allocation2 + $0x63]] }
  0x9c   :  { %v2120_v26 = vmax.f32 %v3299_v7, %v1977_v5  ;;  %v2125_v18 = vmax.f32 %v3300_v46, %v648_v23  ;;  %v2140_v23 = vmax.f32 %v662_v63, %v650_v24  ;;  %v3305_v5 = vld [vmem:[#allocation11_spill] sm:$0xff]  ;;  %v740_v28 = vmin.f32 %v2074_v29, %v2090_v47  ;;  %v3311_v7 = vld [vmem:[#allocation13_spill] sm:$0xff]  ;;  %vm3323_vm2 = vmor %vm1993_vm14, %vm2046_vm3  ;;  %s2861_s5 = sld [smem:[#allocation2 + $0x64]] }
  0x9d   :  { %v2138_v51 = vmax.f32 %v3302_v30, %v649_v41  ;;  %v776_v9 = vstv %s2029_s6  ;;  %v3307_v41 = vld [vmem:[#allocation12_spill] sm:$0xff]  ;;  %v3308_v63 = vld [vmem:[#allocation15_spill] sm:$0xff]  ;;  %v733_v44 = vadd.f32 %v729_v42, %v723_v14  ;;  %v742_v52 = vmin.f32 %v2088_v11, %v2105_v33  ;;  %vm2233_vm5 = vmor %vm3323_vm2, %vm2175_vm11  ;;  %s2879_s6 = sld [smem:[#allocation2 + $0x65]] }
  0x9e   :  { %3301 = vst [vmem:[#allocation10_spill] sm:$0xff] %v2125_v18  ;;  %3304 = vst [vmem:[#allocation31_spill] sm:$0xff] %v2140_v23  ;;  %v743_v59 = vmin.f32 %v2103_v61, %v2107_v27  ;;  %v3312_v14 = vld [vmem:[#allocation16_spill] sm:$0xff]  ;;  %v2181_v42 = vadd.f32 %v735_v3, %v730_v53  ;;  %v2183_v46 = vadd.f32 %v735_v3, %v731_v15  ;;  %vm3313_vm13 = vcmp.le.f32.partialorder %v1645_v43, 0.0 }
  0x9f   :  { %3303 = vst [vmem:[#allocation30_spill] sm:$0xff] %v2138_v51  ;;  %vm3314_vm0 = vcmp.ge.f32.partialorder %v1624_v22, 0.0  ;;  %v774_v8 = vmul.f32 %v1353_v31, %v773_v4  ;;  %v777_v53 = vmul.f32 %v776_v9, %v1355_v32  ;;  %v792_v15 = vstv %s2057_s7  ;;  %vm3327_vm14 = vmor %vm2006_vm15, %vm2063_vm8  ;;  %s2889_s7 = sld [smem:[#allocation2 + $0x66]] }
  0xa0   :  { %vm2193_vm1 = vmor %vm3314_vm0, %vm3313_vm13  ;;  %v795_v24 = vstv %s2078_s8  ;;  %v2209_v22 = vadd.f32 %v735_v3, %v732_v10  ;;  %v778_v43 = vmul.f32 %v776_v9, %v1357_v35  ;;  %v779_v30 = vmul.f32 %v776_v9, %v1359_v36  ;;  %s2896_s8 = sld [smem:[#allocation2 + $0x67]] }
  0xa1   :  { %v780_v4 = vmul.f32 %v776_v9, %v1361_v39  ;;  %vm3319_vm13 = vcmp.le.f32.partialorder %v3286_v19, 0.0  ;;  %vm3320_vm0 = vcmp.ge.f32.partialorder %v3285_v12, 0.0  ;;  %v793_v21 = vmul.f32 %v1353_v31, %v792_v15  ;;  %vm2254_vm3 = vmor %vm3327_vm14, %vm2193_vm1 }
  0xa2   :  { %vm2218_vm9 = vmor %vm3320_vm0, %vm3319_vm13  ;;  %v796_v10 = vmul.f32 %v795_v24, %v1355_v32  ;;  %v797_v23 = vmul.f32 %v795_v24, %v1357_v35  ;;  %v798_v17 = vmul.f32 %v795_v24, %v1359_v36  ;;  %v2237_v19 = vadd.f32 %v735_v3, %v733_v44  ;;  %v3331_v3 = vld [vmem:[#allocation21_spill] sm:$0xff] }
  0xa3   :  { %v2240_v9 = vmin.f32 %v740_v28, %v2181_v42  ;;  %v786_v51 = vstv %s2110_s9  ;;  %vm489_vm11 = vcmp.ge.f32.partialorder %v3330_v16, 0.0  ;;  %vm493_vm13 = vcmp.le.f32.partialorder %v3331_v3, 0.0  ;;  %vm3332_vm15 = vmor %vm2020_vm12, %vm2084_vm10  ;;  %s2907_s9 = sld [smem:[#allocation2 + $0x69]] }
  0xa4   :  { %v781_v28 = vadd.f32 %v777_v53, %v774_v8  ;;  %v799_v44 = vmul.f32 %v795_v24, %v1361_v39  ;;  %v805_v45 = vstv %s2127_s10  ;;  %v811_v15 = vstv %s2144_s11  ;;  %vm2272_vm8 = vmor %vm3332_vm15, %vm2205_vm6  ;;  %s2943_s10 = sld [smem:[#allocation2 + $0x68]] }
  0xa5   :  { %3326 = vst [vmem:[#allocation11_spill] sm:$0xff] %v2240_v9  ;;  %v782_v24 = vadd.f32 %v778_v43, %v774_v8  ;;  %v800_v53 = vadd.f32 %v796_v10, %v793_v21  ;;  %v801_v9 = vadd.f32 %v797_v23, %v793_v21  ;;  %v814_v55 = vstv %s2157_s12  ;;  %vm3337_vm2 = vmor %vm2035_vm4, %vm2099_vm7  ;;  %s2961_s11 = sld [smem:[#allocation2 + $0x6a]] }
  0xa6   :  { %vm2286_vm12 = vmor %vm3337_vm2, %vm2218_vm9  ;;  %v783_v18 = vadd.f32 %v779_v30, %v774_v8  ;;  %v784_v43 = vadd.f32 %v780_v4, %v774_v8  ;;  %v802_v10 = vadd.f32 %v798_v17, %v793_v21  ;;  %v803_v23 = vadd.f32 %v799_v44, %v793_v21  ;;  %v3396_v4 = vld [vmem:[#allocation10_spill] sm:$0xff]  ;;  %s2980_s12 = sld [smem:[#allocation2 + $0x6b]] }
  0xa7   :  { %vm3342_vm14 = vcmp.le.f32.partialorder %v1727_v38, 0.0  ;;  %vm3343_vm15 = vcmp.ge.f32.partialorder %v1717_v57, 0.0  ;;  %v3348_v8 = vmin.f32 %v2076_v40, %v2092_v37  ;;  %v2311_v30 = vmin.f32 %v742_v52, %v2209_v22 }
  0xa8   :  { %vm2298_vm1 = vmor %vm3343_vm15, %vm3342_vm14  ;;  %v812_v38 = vmul.f32 %v1353_v31, %v811_v15  ;;  %v815_v57 = vmul.f32 %v814_v55, %v1355_v32  ;;  %vm3351_vm9 = vcmp.le.f32.partialorder %v3306_v13, 0.0  ;;  %vm3352_vm2 = vcmp.ge.f32.partialorder %v3305_v5, 0.0 }
  0xa9   :  { %v2308_v17 = vmin.f32 %v3348_v8, %v2183_v46  ;;  %3350 = vst [vmem:[#allocation12_spill] sm:$0xff] %v2311_v30  ;;  %vm2321_vm14 = vmor %vm3352_vm2, %vm3351_vm9  ;;  %v2326_v21 = vmin.f32 %v743_v59, %v2237_v19  ;;  %v816_v52 = vmul.f32 %v814_v55, %v1357_v35  ;;  %v817_v44 = vmul.f32 %v814_v55, %v1359_v36 }
  0xaa   :  { %v818_v15 = vmul.f32 %v814_v55, %v1361_v39  ;;  %vm3356_vm15 = vcmp.le.f32.partialorder %v3308_v63, 0.0  ;;  %vm3357_vm4 = vcmp.ge.f32.partialorder %v3307_v41, 0.0  ;;  %v2341_v13 = vadd.f32 %v786_v51, %v781_v28  ;;  %v3406_v55 = vld [vmem:[#allocation8_spill] sm:$0xff] }
  0xab   :  { %3349 = vst [vmem:[#allocation14_spill] sm:$0xff] %v2308_v17  ;;  %3355 = vst [vmem:[#allocation15_spill] sm:$0xff] %v2326_v21  ;;  %v2343_v59 = vadd.f32 %v786_v51, %v782_v24  ;;  %v2345_v8 = vadd.f32 %v805_v45, %v800_v53  ;;  %v2347_v21 = vadd.f32 %v805_v45, %v801_v9  ;;  %vm3360_vm9 = vcmp.le.f32.partialorder %v3312_v14, 0.0 }
  0xac   :  { %vm2337_vm7 = vmor %vm3357_vm4, %vm3356_vm15  ;;  %vm3361_vm2 = vcmp.ge.f32.partialorder %v3311_v7, 0.0  ;;  %v2359_v41 = vadd.f32 %v786_v51, %v783_v18  ;;  %v2361_v63 = vadd.f32 %v786_v51, %v784_v43  ;;  %v2363_v28 = vadd.f32 %v805_v45, %v802_v10  ;;  %v3455_v5 = vld [vmem:[#allocation11_spill] sm:$0xff] }
  0xad   :  { %vm2355_vm10 = vmor %vm3361_vm2, %vm3360_vm9  ;;  %v2365_v24 = vadd.f32 %v805_v45, %v803_v23  ;;  %v3364_v7 = vmax.f32 %v2074_v29, %v2090_v47  ;;  %v3365_v51 = vmax.f32 %v2076_v40, %v2092_v37  ;;  %v819_v9 = vadd.f32 %v815_v57, %v812_v38  ;;  %v3366_v40 = vld [vmem:[#allocation27_spill] sm:$0xff] }
  0xae   :  { %v824_v45 = vstv %s2245_s13  ;;  %v820_v29 = vadd.f32 %v816_v52, %v812_v38  ;;  %v821_v47 = vadd.f32 %v817_v44, %v812_v38  ;;  %v862_v53 = vstv %s2263_s14  ;;  %vm2434_vm2 = vmor %vm489_vm11, %vm493_vm13  ;;  %v3373_v52 = vld [vmem:[#allocation26_spill] sm:$0xff]  ;;  %v3374_v44 = vld [vmem:[#allocation29_spill] sm:$0xff] }
  0xaf   :  { %v2377_v18 = vmax.f32 %v3364_v7, %v2181_v42  ;;  %v2383_v14 = vmax.f32 %v3365_v51, %v2183_v46  ;;  %v822_v42 = vadd.f32 %v818_v15, %v812_v38  ;;  %v3367_v37 = vmax.f32 %v2088_v11, %v2105_v33  ;;  %v3369_v11 = vld [vmem:[#allocation25_spill] sm:$0xff]  ;;  %v3370_v33 = vld [vmem:[#allocation28_spill] sm:$0xff] }
  0xb0   :  { %v3368_v43 = vmax.f32 %v2103_v61, %v2107_v27  ;;  %v829_v23 = vmin.f32 %v2341_v13, %v2345_v8  ;;  %v830_v38 = vmin.f32 %v2343_v59, %v2347_v21  ;;  %v2440_v15 = vadd.f32 %v824_v45, %v819_v9 }
  0xb1   :  { %v2403_v46 = vmax.f32 %v3367_v37, %v2209_v22  ;;  %v863_v16 = vmul.f32 %v1353_v31, %v862_v53  ;;  %vm3375_vm11 = vcmp.le.f32.partialorder %v3336_v20, 0.0  ;;  %vm3376_vm13 = vcmp.ge.f32.partialorder %v3335_v56, 0.0 }
  0xb2   :  { %v2409_v10 = vmax.f32 %v3368_v43, %v2237_v19  ;;  %v865_v19 = vstv %s2292_s15  ;;  %vm2453_vm0 = vmor %vm3376_vm13, %vm3375_vm11  ;;  %v2457_v9 = vadd.f32 %v824_v45, %v820_v29  ;;  %v2459_v37 = vadd.f32 %v824_v45, %v821_v47  ;;  %v3424_v30 = vld [vmem:[#allocation15_spill] sm:$0xff] }
  0xb3   :  { %v2461_v43 = vadd.f32 %v824_v45, %v822_v42  ;;  %vm3379_vm9 = vcmp.le.f32.partialorder %v3341_v34, 0.0  ;;  %vm3380_vm6 = vcmp.ge.f32.partialorder %v3340_v60, 0.0  ;;  %v866_v56 = vmul.f32 %v865_v19, %v1355_v32  ;;  %v3407_v34 = vld [vmem:[#allocation31_spill] sm:$0xff] }
  0xb4   :  { %vm2469_vm4 = vmor %vm3380_vm6, %vm3379_vm9  ;;  %v867_v29 = vmul.f32 %v865_v19, %v1357_v35  ;;  %v868_v47 = vmul.f32 %v865_v19, %v1359_v36  ;;  %v869_v45 = vmul.f32 %v865_v19, %v1361_v39  ;;  %vm3383_vm11 = vcmp.le.f32.partialorder %v3347_v2, 0.0 }
  0xb5   :  { %vm3384_vm13 = vcmp.ge.f32.partialorder %v3346_v25, 0.0  ;;  %v875_v60 = vstv %s2315_s16  ;;  %v881_v42 = vstv %s2331_s0  ;;  %v884_v53 = vstv %s2349_s17  ;;  %vm3387_vm6 = vmor %vm2233_vm5, %vm2298_vm1 }
  0xb6   :  { %vm2481_vm15 = vmor %vm3384_vm13, %vm3383_vm11  ;;  %v900_v3 = vstv %s2367_s18  ;;  %v870_v25 = vadd.f32 %v866_v56, %v863_v16  ;;  %v871_v19 = vadd.f32 %v867_v29, %v863_v16  ;;  %v872_v7 = vadd.f32 %v868_v47, %v863_v16  ;;  %v3400_v47 = vld [vmem:[#allocation9_spill] sm:$0xff] }
  0xb7   :  { %vm2498_vm9 = vmor %vm3387_vm6, %vm2434_vm2  ;;  %v873_v22 = vadd.f32 %v869_v45, %v863_v16  ;;  %vm667_vm5 = vcmp.ge.f32.partialorder %v2027_v1, 0.0  ;;  %vm671_vm1 = vcmp.le.f32.partialorder %v2120_v26, 0.0  ;;  %v882_v0 = vmul.f32 %v1353_v31, %v881_v42 }
  0xb8   :  { %vm3390_vm11 = vmor %vm2254_vm3, %vm2321_vm14  ;;  %v885_v57 = vmul.f32 %v884_v53, %v1355_v32  ;;  %v886_v16 = vmul.f32 %v884_v53, %v1357_v35  ;;  %v887_v51 = vmul.f32 %v884_v53, %v1359_v36  ;;  %v2535_v56 = vmin.f32 %v829_v23, %v2440_v15  ;;  %v3401_v23 = vld [vmem:[#allocation30_spill] sm:$0xff] }
  0xb9   :  { %vm2509_vm13 = vmor %vm3390_vm11, %vm2453_vm0  ;;  %v2537_v29 = vadd.f32 %v875_v60, %v870_v25  ;;  %v2539_v20 = vadd.f32 %v875_v60, %v871_v19  ;;  %v894_v49 = vstv %s2415_s19  ;;  %v888_v45 = vmul.f32 %v884_v53, %v1361_v39 }
  0xba   :  { %vm3393_vm3 = vmor %vm2272_vm8, %vm2337_vm7  ;;  %v889_v42 = vadd.f32 %v885_v57, %v882_v0  ;;  %v890_v25 = vadd.f32 %v886_v16, %v882_v0  ;;  %v891_v19 = vadd.f32 %v887_v51, %v882_v0  ;;  %vm3402_vm11 = vcmp.le.f32.partialorder %v1926_v58, 0.0 }
  0xbb   :  { %vm2528_vm0 = vmor %vm3393_vm3, %vm2469_vm4  ;;  %vm3403_vm3 = vcmp.ge.f32.partialorder %v1893_v6, 0.0  ;;  %v2566_v27 = vadd.f32 %v875_v60, %v872_v7  ;;  %v2568_v61 = vadd.f32 %v875_v60, %v873_v22  ;;  %v901_v53 = vmul.f32 %v1353_v31, %v900_v3 }
  0xbc   :  { %vm3397_vm8 = vmor %vm2286_vm12, %vm2355_vm10  ;;  %v903_v57 = vstv %s2447_s20  ;;  %v892_v58 = vadd.f32 %v888_v45, %v882_v0  ;;  %v2580_v16 = vadd.f32 %v894_v49, %v889_v42  ;;  %v2582_v51 = vadd.f32 %v894_v49, %v890_v25 }
  0xbd   :  { %vm2549_vm7 = vmor %vm3397_vm8, %vm2481_vm15  ;;  %vm3408_vm15 = vcmp.le.f32.partialorder %v3366_v40, 0.0  ;;  %vm3409_vm8 = vcmp.ge.f32.partialorder %v1895_v50, 0.0  ;;  %v2584_v7 = vadd.f32 %v894_v49, %v891_v19  ;;  %v904_v40 = vmul.f32 %v903_v57, %v1355_v32 }
  0xbe   :  { %vm2560_vm14 = vmor %vm3403_vm3, %vm3402_vm11  ;;  %vm3412_vm11 = vcmp.le.f32.partialorder %v3370_v33, 0.0  ;;  %vm3413_vm3 = vcmp.ge.f32.partialorder %v3369_v11, 0.0  ;;  %v905_v22 = vmul.f32 %v903_v57, %v1357_v35  ;;  %v906_v3 = vmul.f32 %v903_v57, %v1359_v36 }
  0xbf   :  { %vm2576_vm4 = vmor %vm3409_vm8, %vm3408_vm15  ;;  %v907_v60 = vmul.f32 %v903_v57, %v1361_v39  ;;  %vm3416_vm15 = vcmp.le.f32.partialorder %v3374_v44, 0.0  ;;  %vm3417_vm8 = vcmp.ge.f32.partialorder %v3373_v52, 0.0  ;;  %v2614_v33 = vmin.f32 %v830_v38, %v2457_v9 }
  0xc0   :  { %vm2592_vm12 = vmor %vm3413_vm3, %vm3412_vm11  ;;  %v3420_v0 = vmin.f32 %v2359_v41, %v2363_v28  ;;  %v2622_v44 = vadd.f32 %v894_v49, %v892_v58  ;;  %v913_v52 = vstv %s2489_s21  ;;  %v908_v42 = vadd.f32 %v904_v40, %v901_v53 }
  0xc1   :  { %vm2606_vm10 = vmor %vm3417_vm8, %vm3416_vm15  ;;  %v909_v38 = vadd.f32 %v905_v22, %v901_v53  ;;  %v910_v25 = vadd.f32 %v906_v3, %v901_v53  ;;  %v911_v19 = vadd.f32 %v907_v60, %v901_v53  ;;  %v918_v57 = vmin.f32 %v2537_v29, %v2580_v16 }
  0xc2   :  { %v2620_v45 = vmin.f32 %v3420_v0, %v2459_v37  ;;  %v919_v58 = vmin.f32 %v2539_v20, %v2582_v51  ;;  %v920_v53 = vmin.f32 %v2566_v27, %v2584_v7  ;;  %v951_v40 = vstv %s2519_s22  ;;  %vm2672_vm15 = vmor %vm667_vm5, %vm671_vm1 }
  0xc3   :  { %v914_v22 = vadd.f32 %v913_v52, %v908_v42  ;;  %v915_v3 = vadd.f32 %v913_v52, %v909_v38  ;;  %v916_v60 = vadd.f32 %v913_v52, %v910_v25  ;;  %v921_v0 = vmin.f32 %v2568_v61, %v2622_v44 }
  0xc4   :  { %v917_v49 = vadd.f32 %v913_v52, %v911_v19  ;;  %v926_v17 = vmax.f32 %v2537_v29, %v2580_v16  ;;  %v927_v42 = vmax.f32 %v2539_v20, %v2582_v51  ;;  %v928_v38 = vmax.f32 %v2566_v27, %v2584_v7 }
  0xc5   :  { %v3425_v29 = vmin.f32 %v2361_v63, %v2365_v24  ;;  %v3426_v26 = vmax.f32 %v2341_v13, %v2345_v8  ;;  %v3427_v27 = vmax.f32 %v2343_v59, %v2347_v21  ;;  %v3428_v51 = vmax.f32 %v2359_v41, %v2363_v28  ;;  %v3465_v13 = vld [vmem:[#allocation12_spill] sm:$0xff] }
  0xc6   :  { %vm3429_vm5 = vcmp.le.f32.partialorder %v3396_v4, 0.0  ;;  %vm3430_vm1 = vcmp.ge.f32.partialorder %v2052_v62, 0.0  ;;  %v3433_v21 = vmax.f32 %v2361_v63, %v2365_v24  ;;  %v929_v8 = vmax.f32 %v2568_v61, %v2622_v44 }
  0xc7   :  { %v2682_v20 = vmin.f32 %v3425_v29, %v2461_v43  ;;  %v2688_v1 = vmax.f32 %v3426_v26, %v2440_v15  ;;  %v2694_v16 = vmax.f32 %v3427_v27, %v2457_v9  ;;  %v2700_v7 = vmax.f32 %v3428_v51, %v2459_v37  ;;  %vm2708_vm6 = vmor %vm3430_vm1, %vm3429_vm5 }
  0xc8   :  { %v2716_v59 = vmax.f32 %v3433_v21, %v2461_v43  ;;  %v952_v41 = vmul.f32 %v1353_v31, %v951_v40  ;;  %v954_v28 = vstv %s2586_s23  ;;  %vm3434_vm2 = vcmp.le.f32.partialorder %v3401_v23, 0.0 }
  0xc9   :  { %vm3435_vm5 = vcmp.ge.f32.partialorder %v3400_v47, 0.0  ;;  %v2732_v15 = vmin.f32 %v918_v57, %v914_v22  ;;  %v2734_v63 = vmin.f32 %v919_v58, %v915_v3  ;;  %v2736_v24 = vmin.f32 %v920_v53, %v916_v60 }
  0xca   :  { %vm2728_vm1 = vmor %vm3435_vm5, %vm3434_vm2  ;;  %v964_v61 = vstv %s2600_s24  ;;  %vm3438_vm8 = vcmp.le.f32.partialorder %v3407_v34, 0.0  ;;  %vm3439_vm11 = vcmp.ge.f32.partialorder %v3406_v55, 0.0  ;;  %v2749_v37 = vmin.f32 %v921_v0, %v917_v49 }
  0xcb   :  { %vm2745_vm3 = vmor %vm3439_vm11, %vm3438_vm8  ;;  %v2751_v43 = vmax.f32 %v926_v17, %v914_v22  ;;  %v2753_v4 = vmax.f32 %v927_v42, %v915_v3  ;;  %v2755_v47 = vmax.f32 %v928_v38, %v916_v60  ;;  %v955_v55 = vmul.f32 %v954_v28, %v1355_v32 }
  0xcc   :  { %vm3442_vm2 = vmor %vm2498_vm9, %vm2560_vm14  ;;  %v956_v17 = vmul.f32 %v954_v28, %v1357_v35  ;;  %v957_v34 = vmul.f32 %v954_v28, %v1359_v36  ;;  %v958_v44 = vmul.f32 %v954_v28, %v1361_v39  ;;  %vm845_vm14 = vcmp.ge.f32.partialorder %v2535_v56, 0.0 }
  0xcd   :  { %vm2764_vm11 = vmor %vm3442_vm2, %vm2672_vm15  ;;  %vm849_vm15 = vcmp.le.f32.partialorder %v2688_v1, 0.0  ;;  %v2785_v48 = vmax.f32 %v929_v8, %v917_v49  ;;  %v970_v52 = vstv %s2625_s25  ;;  %v973_v19 = vstv %s2631_s26 }
  0xce   :  { %vm3445_vm8 = vmor %vm2509_vm13, %vm2576_vm4  ;;  %v989_v57 = vstv %s2646_s27  ;;  %vm850_vm5 = vcmp.le.f32.partialorder %v2694_v16, 0.0  ;;  %v959_v6 = vadd.f32 %v955_v55, %v952_v41  ;;  %v960_v49 = vadd.f32 %v956_v17, %v952_v41 }
  0xcf   :  { %vm2779_vm9 = vmor %vm3445_vm8, %vm2708_vm6  ;;  %vm846_vm6 = vcmp.ge.f32.partialorder %v2614_v33, 0.0  ;;  %v961_v58 = vadd.f32 %v957_v34, %v952_v41  ;;  %v962_v53 = vadd.f32 %v958_v44, %v952_v41  ;;  %v971_v50 = vmul.f32 %v1353_v31, %v970_v52 }
  0xd0   :  { %vm3448_vm13 = vmor %vm2528_vm0, %vm2592_vm12  ;;  %v974_v40 = vmul.f32 %v973_v19, %v1355_v32  ;;  %v975_v22 = vmul.f32 %v973_v19, %v1357_v35  ;;  %v976_v3 = vmul.f32 %v973_v19, %v1359_v36  ;;  %vm3454_vm8 = vcmp.le.f32.partialorder %v2377_v18, 0.0  ;;  %v3460_v18 = vld [vmem:[#allocation14_spill] sm:$0xff] }
  0xd1   :  { %vm2797_vm4 = vmor %vm3448_vm13, %vm2728_vm1  ;;  %v2830_v60 = vadd.f32 %v964_v61, %v959_v6  ;;  %v2832_v0 = vadd.f32 %v964_v61, %v960_v49  ;;  %v2834_v42 = vadd.f32 %v964_v61, %v961_v58  ;;  %v983_v38 = vstv %s2702_s28  ;;  %s1327_s28 = smov [#allocation5]  }
  0xd2   :  { %vm3451_vm0 = vmor %vm2549_vm7, %vm2606_vm10  ;;  %vm3456_vm7 = vcmp.ge.f32.partialorder %v3455_v5, 0.0  ;;  %v977_v29 = vmul.f32 %v973_v19, %v1361_v39  ;;  %v978_v26 = vadd.f32 %v974_v40, %v971_v50  ;;  %v979_v27 = vadd.f32 %v975_v22, %v971_v50 }
  0xd3   :  { %vm2810_vm12 = vmor %vm3451_vm0, %vm2745_vm3  ;;  %vm3459_vm0 = vcmp.le.f32.partialorder %v2383_v14, 0.0  ;;  %v980_v51 = vadd.f32 %v976_v3, %v971_v50  ;;  %vm3464_vm3 = vcmp.le.f32.partialorder %v2403_v46, 0.0  ;;  %vm3466_vm13 = vcmp.ge.f32.partialorder %v3465_v13, 0.0 }
  0xd4   :  { %vm2824_vm10 = vmor %vm3456_vm7, %vm3454_vm8  ;;  %vm3461_vm8 = vcmp.ge.f32.partialorder %v3460_v18, 0.0  ;;  %v2856_v14 = vadd.f32 %v964_v61, %v962_v53  ;;  %v990_v8 = vmul.f32 %v1353_v31, %v989_v57  ;;  %v992_v41 = vstv %s2722_s29 }
  0xd5   :  { %vm2841_vm7 = vmor %vm3461_vm8, %vm3459_vm0  ;;  %v1002_v28 = vstv %s2739_s30  ;;  %vm3469_vm0 = vcmp.le.f32.partialorder %v2409_v10, 0.0  ;;  %vm3470_vm8 = vcmp.ge.f32.partialorder %v3424_v30, 0.0  ;;  %v3471_v46 = vmov 0 }
  0xd6   :  { %vm2852_vm1 = vmor %vm3466_vm13, %vm3464_vm3  ;;  %v981_v62 = vadd.f32 %v977_v29, %v971_v50  ;;  %v984_v9 = vadd.f32 %v983_v38, %v978_v26  ;;  %v985_v55 = vadd.f32 %v983_v38, %v979_v27  ;;  %v986_v17 = vadd.f32 %v983_v38, %v980_v51 }
  0xd7   :  { %vm2867_vm2 = vmor %vm3470_vm8, %vm3469_vm0  ;;  %v993_v61 = vmul.f32 %v992_v41, %v1355_v32  ;;  %v994_v34 = vmul.f32 %v992_v41, %v1357_v35  ;;  %v995_v10 = vmul.f32 %v992_v41, %v1359_v36  ;;  %v996_v30 = vmul.f32 %v992_v41, %v1361_v39 }
  0xd8   :  { %v3472_v46 = vsel %vm2867_vm2, 4294967295, %v3471_v46  ;;  %v987_v44 = vadd.f32 %v983_v38, %v981_v62  ;;  %v1007_v52 = vmin.f32 %v2830_v60, %v984_v9  ;;  %v1008_v19 = vmin.f32 %v2832_v0, %v985_v55  ;;  %vm2913_vm3 = vmor %vm845_vm14, %vm849_vm15 }
  0xd9   :  { %v1009_v57 = vmin.f32 %v2834_v42, %v986_v17  ;;  %v997_v6 = vadd.f32 %v993_v61, %v990_v8  ;;  %v998_v49 = vadd.f32 %v994_v34, %v990_v8  ;;  %v999_v58 = vadd.f32 %v995_v10, %v990_v8  ;;  %vm2921_vm13 = vmor %vm846_vm6, %vm850_vm5 }
  0xda   :  { %v1000_v53 = vadd.f32 %v996_v30, %v990_v8  ;;  %v1010_v50 = vmin.f32 %v2856_v14, %v987_v44  ;;  %v1015_v40 = vmax.f32 %v2830_v60, %v984_v9  ;;  %v1016_v22 = vmax.f32 %v2832_v0, %v985_v55 }
  0xdb   :  { %v1017_v3 = vmax.f32 %v2834_v42, %v986_v17  ;;  %v1003_v38 = vadd.f32 %v1002_v28, %v997_v6  ;;  %v1004_v18 = vadd.f32 %v1002_v28, %v998_v49  ;;  %v1005_v29 = vadd.f32 %v1002_v28, %v999_v58 }
  0xdc   :  { %v1006_v26 = vadd.f32 %v1002_v28, %v1000_v53  ;;  %v1018_v56 = vmax.f32 %v2856_v14, %v987_v44  ;;  %v1040_v1 = vstv %s2846_s4  ;;  %vm3477_vm14 = vcmp.le.f32.partialorder %v2700_v7, 0.0 }
  0xdd   :  { %vm3478_vm15 = vcmp.ge.f32.partialorder %v2620_v45, 0.0  ;;  %vm939_vm6 = vcmp.le.f32.partialorder %v2753_v4, 0.0  ;;  %v2938_v33 = vmin.f32 %v1007_v52, %v1003_v38  ;;  %v2940_v16 = vmin.f32 %v1008_v19, %v1004_v18 }
  0xde   :  { %vm2933_vm2 = vmor %vm3478_vm15, %vm3477_vm14  ;;  %v1043_v42 = vstv %s2861_s5  ;;  %vm3481_vm5 = vcmp.le.f32.partialorder %v2716_v59, 0.0  ;;  %vm3482_vm0 = vcmp.ge.f32.partialorder %v2682_v20, 0.0  ;;  %v2953_v45 = vmin.f32 %v1009_v57, %v1005_v29 }
  0xdf   :  { %vm2949_vm8 = vmor %vm3482_vm0, %vm3481_vm5  ;;  %v2955_v27 = vmax.f32 %v1015_v40, %v1003_v38  ;;  %v2957_v51 = vmax.f32 %v1016_v22, %v1004_v18  ;;  %v2959_v13 = vmax.f32 %v1017_v3, %v1005_v29  ;;  %vm940_vm15 = vcmp.le.f32.partialorder %v2755_v47, 0.0 }
  0xe0   :  { %vm3485_vm0 = vmor %vm2764_vm11, %vm2824_vm10  ;;  %v2975_v59 = vmin.f32 %v1010_v50, %v1006_v26  ;;  %v2977_v14 = vmax.f32 %v1018_v56, %v1006_v26  ;;  %v1041_v8 = vmul.f32 %v1353_v31, %v1040_v1  ;;  %v1053_v11 = vstv %s2879_s6 }
  0xe1   :  { %vm2970_vm14 = vmor %vm3485_vm0, %vm2913_vm3  ;;  %vm941_vm3 = vcmp.le.f32.partialorder %v2785_v48, 0.0  ;;  %v1044_v25 = vmul.f32 %v1043_v42, %v1355_v32  ;;  %v1045_v41 = vmul.f32 %v1043_v42, %v1357_v35  ;;  %v1046_v28 = vmul.f32 %v1043_v42, %v1359_v36 }
  0xe2   :  { %vm3488_vm11 = vmor %vm2779_vm9, %vm2841_vm7  ;;  %v1047_v62 = vmul.f32 %v1043_v42, %v1361_v39  ;;  %v1059_v21 = vstv %s2889_s7  ;;  %v1062_v9 = vstv %s2896_s8  ;;  %v1078_v55 = vstv %s2907_s9 }
  0xe3   :  { %vm2989_vm10 = vmor %vm3488_vm11, %vm2921_vm13  ;;  %vm1029_vm13 = vcmp.le.f32.partialorder %v2959_v13, 0.0  ;;  %vm3498_vm11 = vcmp.le.f32.partialorder %v2751_v43, 0.0  ;;  %vm3499_vm5 = vcmp.ge.f32.partialorder %v2732_v15, 0.0  ;;  %v1049_v17 = vadd.f32 %v1045_v41, %v1041_v8 }
  0xe4   :  { %vm3491_vm9 = vmor %vm2797_vm4, %vm2852_vm1  ;;  %vm3494_vm4 = vnez %v3472_v46  ;;  %v1048_v46 = vadd.f32 %v1044_v25, %v1041_v8  ;;  %v1050_v61 = vadd.f32 %v1046_v28, %v1041_v8  ;;  %v1051_v34 = vadd.f32 %v1047_v62, %v1041_v8 }
  0xe5   :  { %vm3004_vm7 = vmor %vm3491_vm9, %vm2933_vm2  ;;  %vm1025_vm9 = vcmp.ge.f32.partialorder %v2953_v45, 0.0  ;;  %v1060_v15 = vmul.f32 %v1353_v31, %v1059_v21  ;;  %v1063_v10 = vmul.f32 %v1062_v9, %v1355_v32  ;;  %v1064_v30 = vmul.f32 %v1062_v9, %v1357_v35 }
  0xe6   :  { %vm3495_vm1 = vmor %vm2810_vm12, %vm3494_vm4  ;;  %vm3502_vm4 = vcmp.ge.f32.partialorder %v2734_v63, 0.0  ;;  %v1065_v44 = vmul.f32 %v1062_v9, %v1359_v36  ;;  %v1054_v4 = vadd.f32 %v1053_v11, %v1048_v46  ;;  %v1055_v52 = vadd.f32 %v1053_v11, %v1049_v17 }
  0xe7   :  { %vm3021_vm2 = vmor %vm3495_vm1, %vm2949_vm8  ;;  %v1056_v19 = vadd.f32 %v1053_v11, %v1050_v61  ;;  %v1072_v57 = vstv %s2943_s10  ;;  %v1066_v47 = vmul.f32 %v1062_v9, %v1361_v39  ;;  %v1067_v49 = vadd.f32 %v1063_v10, %v1060_v15  ;;  %v1140_v61 = vld [vmem:[%s3217_s1] sm:$0xff]  ;;  %v1142_v10 = vld [vmem:[%s3217_s1 + $0x10] sm:$0xff] }
  0xe8   :  { %vm3034_vm0 = vmor %vm3499_vm5, %vm3498_vm11  ;;  %vm3505_vm5 = vcmp.ge.f32.partialorder %v2736_v24, 0.0  ;;  %v1068_v24 = vadd.f32 %v1064_v30, %v1060_v15  ;;  %v1069_v58 = vadd.f32 %v1065_v44, %v1060_v15  ;;  %v1057_v53 = vadd.f32 %v1053_v11, %v1051_v34  ;;  %v1141_v34 = vld [vmem:[%s3217_s1 + $0x8] sm:$0xff]  ;;  %v1143_v44 = vld [vmem:[%s3217_s1 + $0x18] sm:$0xff] }
  0xe9   :  { %vm3044_vm1 = vmor %vm3502_vm4, %vm939_vm6  ;;  %vm3508_vm6 = vcmp.ge.f32.partialorder %v2749_v37, 0.0  ;;  %v1079_v50 = vmul.f32 %v1353_v31, %v1078_v55  ;;  %v1081_v48 = vstv %s2961_s11  ;;  %v1091_v40 = vstv %s2980_s12 }
  0xea   :  { %vm3056_vm11 = vmor %vm3505_vm5, %vm940_vm15  ;;  %v1070_v37 = vadd.f32 %v1066_v47, %v1060_v15  ;;  %v1073_v22 = vadd.f32 %v1072_v57, %v1067_v49  ;;  %v1074_v3 = vadd.f32 %v1072_v57, %v1068_v24  ;;  %v1075_v5 = vadd.f32 %v1072_v57, %v1069_v58 }
  0xeb   :  { %vm3065_vm4 = vmor %vm3508_vm6, %vm941_vm3  ;;  %v1082_v38 = vmul.f32 %v1081_v48, %v1355_v32  ;;  %v1083_v31 = vmul.f32 %v1081_v48, %v1357_v35  ;;  %v1084_v18 = vmul.f32 %v1081_v48, %v1359_v36  ;;  %v1085_v29 = vmul.f32 %v1081_v48, %v1361_v39 }
  0xec   :  { %v1076_v26 = vadd.f32 %v1072_v57, %v1070_v37  ;;  %v1096_v60 = vmin.f32 %v1054_v4, %v1073_v22  ;;  %v1097_v56 = vmin.f32 %v1055_v52, %v1074_v3  ;;  %v1098_v1 = vmin.f32 %v1056_v19, %v1075_v5 }
  0xed   :  { %vm3511_vm3 = vcmp.le.f32.partialorder %v2955_v27, 0.0  ;;  %vm3512_vm5 = vcmp.ge.f32.partialorder %v2938_v33, 0.0  ;;  %v1086_v35 = vadd.f32 %v1082_v38, %v1079_v50  ;;  %v1087_v36 = vadd.f32 %v1083_v31, %v1079_v50 }
  0xee   :  { %vm3097_vm15 = vmor %vm3512_vm5, %vm3511_vm3  ;;  %v1088_v39 = vadd.f32 %v1084_v18, %v1079_v50  ;;  %v1089_v0 = vadd.f32 %v1085_v29, %v1079_v50  ;;  %vm3515_vm12 = vcmp.le.f32.partialorder %v2957_v51, 0.0  ;;  %vm3516_vm6 = vcmp.ge.f32.partialorder %v2940_v16, 0.0 }
  0xef   :  { %vm3105_vm8 = vmor %vm3516_vm6, %vm3515_vm12  ;;  %v1099_v7 = vmin.f32 %v1057_v53, %v1076_v26  ;;  %v1104_v27 = vmax.f32 %v1054_v4, %v1073_v22  ;;  %v1105_v8 = vmax.f32 %v1055_v52, %v1074_v3  ;;  %v1106_v33 = vmax.f32 %v1056_v19, %v1075_v5 }
  0xf0   :  { %vm3113_vm3 = vmor %vm1025_vm9, %vm1029_vm13  ;;  %v1092_v25 = vadd.f32 %v1091_v40, %v1086_v35  ;;  %v1093_v51 = vadd.f32 %v1091_v40, %v1087_v36  ;;  %v1094_v41 = vadd.f32 %v1091_v40, %v1088_v39  ;;  %v1095_v16 = vadd.f32 %v1091_v40, %v1089_v0 }
  0xf1   :  { %vm3521_vm12 = vcmp.le.f32.partialorder %v2977_v14, 0.0  ;;  %vm3522_vm5 = vcmp.ge.f32.partialorder %v2975_v59, 0.0  ;;  %v1107_v62 = vmax.f32 %v1057_v53, %v1076_v26  ;;  %vm3525_vm13 = vmor %vm2970_vm14, %vm3034_vm0  ;;  %v3526_v45 = vmov 0 }
  0xf2   :  { %vm3121_vm6 = vmor %vm3522_vm5, %vm3521_vm12  ;;  %v1100_v13 = vmin.f32 %v1096_v60, %v1092_v25  ;;  %v1101_v14 = vmin.f32 %v1097_v56, %v1093_v51  ;;  %v1102_v21 = vmin.f32 %v1098_v1, %v1094_v41  ;;  %v1103_v59 = vmin.f32 %v1099_v7, %v1095_v16 }
  0xf3   :  { %vm3132_vm9 = vmor %vm3525_vm13, %vm3097_vm15  ;;  %v3529_v20 = vmov 0  ;;  %v1108_v9 = vmax.f32 %v1104_v27, %v1092_v25  ;;  %v1109_v55 = vmax.f32 %v1105_v8, %v1093_v51  ;;  %v1110_v54 = vmax.f32 %v1106_v33, %v1094_v41 }
  0xf4   :  { %v3527_v45 = vsel %vm3132_vm9, 4294967295, %v3526_v45  ;;  %vm3528_vm12 = vmor %vm2989_vm10, %vm3044_vm1  ;;  %v1111_v46 = vmax.f32 %v1107_v62, %v1095_v16  ;;  %v3532_v23 = vmov 0  ;;  %vm1112_vm10 = vcmp.ge.f32.partialorder %v1100_v13, 0.0 }
  0xf5   :  { %vm3143_vm5 = vmor %vm3528_vm12, %vm3105_vm8  ;;  %vm1113_vm8 = vcmp.ge.f32.partialorder %v1101_v14, 0.0  ;;  %vm1114_vm13 = vcmp.ge.f32.partialorder %v1102_v21, 0.0  ;;  %vm1116_vm12 = vcmp.le.f32.partialorder %v1108_v9, 0.0  ;;  %v1326_v43 = vmov 0.0  }
  0xf6   :  { %v3530_v20 = vsel %vm3143_vm5, 4294967295, %v3529_v20  ;;  %vm3531_vm14 = vmor %vm3004_vm7, %vm3056_vm11  ;;  %vm1117_vm7 = vcmp.le.f32.partialorder %v1109_v55, 0.0  ;;  %vm1118_vm11 = vcmp.le.f32.partialorder %v1110_v54, 0.0 }
  0xf7   :  { %vm3154_vm0 = vmor %vm3531_vm14, %vm3113_vm3  ;;  %vm1115_vm3 = vcmp.ge.f32.partialorder %v1103_v59, 0.0  ;;  %vm1119_vm14 = vcmp.le.f32.partialorder %v1111_v46, 0.0 }
  0xf8   :  { %v3533_v23 = vsel %vm3154_vm0, 4294967295, %v3532_v23  ;;  %vm3534_vm1 = vmor %vm3021_vm2, %vm3065_vm4  ;;  %vm3541_vm4 = vnez %v3527_v45 }
  0xf9   :  { %vm3165_vm15 = vmor %vm3534_vm1, %vm3121_vm6  ;;  %vm3543_vm1 = vnez %v3533_v23 }
  0xfa   :  { %vm1120_vm0 = vmor %vm1112_vm10, %vm1116_vm12  ;;  %vm3542_vm10 = vnez %v3530_v20 }
  0xfb   :  { %vm1121_vm5 = vmor %vm1113_vm8, %vm1117_vm7 }
  0xfc   :  { %vm3169_vm9 = vmor %vm1114_vm13, %vm1118_vm11 }
  0xfd   :  { %vm3173_vm2 = vmor %vm1115_vm3, %vm1119_vm14 }
  0xfe   :  { %vm1124_vm6 = vmor %vm3541_vm4, %vm1120_vm0 }
  0xff   :  { %vm1125_vm8 = vmor %vm3542_vm10, %vm1121_vm5  ;;  %v1292_v15 = vsel %vm1124_vm6, 1.0, %v1326_v43 }
 0x100   :  { %vm1126_vm13 = vmor %vm3543_vm1, %vm3169_vm9  ;;  %v1293_v30 = vsel %vm1125_vm8, 1.0, %v1326_v43  ;;  %1136 = vst [vmem:[%s3218_s2] sm:$0xff] %v1292_v15  ;;  %v1144_v63 = vsub.f32 %v1292_v15, %v1140_v61 }
 0x101   :  { %vm1127_vm5 = vmor %vm3165_vm15, %vm3173_vm2  ;;  %v1294_v4 = vsel %vm1126_vm13, 1.0, %v1326_v43  ;;  %1137 = vst [vmem:[%s3218_s2 + $0x8] sm:$0xff] %v1293_v30  ;;  %v1145_v52 = vsub.f32 %v1293_v30, %v1141_v34 }
 0x102   :  { %v1295_v19 = vsel %vm1127_vm5, 1.0, %v1326_v43  ;;  %1138 = vst [vmem:[%s3218_s2 + $0x10] sm:$0xff] %v1294_v4  ;;  %v1146_v57 = vsub.f32 %v1294_v4, %v1142_v10  ;;  %v1148_v6 = vmul.f32 %v1144_v63, %v1144_v63 }
 0x103   :  { %1139 = vst [vmem:[%s3218_s2 + $0x18] sm:$0xff] %v1295_v19  ;;  %v1147_v47 = vsub.f32 %v1295_v19, %v1143_v44  ;;  %v1149_v49 = vmul.f32 %v1145_v52, %v1145_v52 }
 0x104   :  { %v1150_v24 = vmul.f32 %v1146_v57, %v1146_v57 }
 0x105   :  { %v1151_v58 = vmul.f32 %v1147_v47, %v1147_v47  ;;  %v1152_v53 = vadd.f32 %v1149_v49, %v1148_v6 }
 0x107   :  { %v1153_v50 = vadd.f32 %v1152_v53, %v1150_v24 }
 0x109   :  { %v1154_v48 = vadd.f32 %v1153_v50, %v1151_v58 }
 0x10b   :  { %1155 = vadd.xlane.f32.xlu0 %v1154_v48 }
 0x194   :  { %v1156_v40 = vpop.xlane.xlu0 %1155 }
 0x195   :  { %v1157_v37 = vrot.slane %v1156_v40, 4 }
 0x197   :  { %v1158_v22 = vadd.f32 %v1157_v37, %v1156_v40 }
 0x199   :  { %v1159_v3 = vrot.slane %v1158_v22, 2 }
 0x19b   :  { %v1160_v5 = vadd.f32 %v1159_v3, %v1158_v22 }
 0x19d   :  { %v1161_v38 = vrot.slane %v1160_v5, 1 }
 0x19f   :  { %v1162_v31 = vadd.f32 %v1161_v38, %v1160_v5 }
 0x1a1   :  { %1296 = vpush %v1162_v31 }
 0x1d2   :  { %s1297_s27 = spop %1296 }
 0x1d3   :  { %1165 = sst [smem:[#allocation5]] %s1297_s27 }
 0x1d4   :  { %1175 = dma.smem_to_hbm %s1327_s28, 16, %s3219_s3, [#allocation3]  }
 0x1d5   :  { %1323 = dma.done.wait [#allocation3], 16  }
 0x1d6   :  { %1324 = vsyncadd [#allocation3], 4294967280 }
 0x1d7   :  { %1181 = sfence }
 0x1d8   :  { %1182 = vsyncpa [#allocation3], 1 }
 0x1d9   :  { %1183 = vsyncpa [#allocation4], 1 }

</bundles_post_ra>
